<compile_context>
chip_gen: v6e
topology: v6e:2x2x1
jax: 0.10.0
libtpu: 0.0.40
codegen_flags: <defaults>
</compile_context>

<pallas_src>
import functools

import jax
import jax.numpy as jnp
from jax import lax
from jax.experimental import pallas as pl
from jax.experimental.pallas import tpu as pltpu


# ---------------------------------------------------------------------------
# Fused MHSA kernel: one grid point == one batch element.
# ---------------------------------------------------------------------------
def _mhsa_kernel(x_ref, wq_ref, wk_ref, wv_ref, wo_ref, bo_ref, pmat_ref,
                 o_ref, q_scr, k_scr, v_scr, *, nb_head, scale):
    H = nb_head
    N, E = x_ref.shape
    Dh = E // H
    G = N // H                      # rows of the (N, E) activation owned by one head

    x = x_ref[...]                  # (N, E)
    acc = jnp.zeros((N, E), jnp.float32)

    for h in range(H):
        x_slab = x[h * G:(h + 1) * G, :]                      # (G, E)

        # Assemble this head's (row-permuted) Q/K/V.  Permuted row c*G + a holds
        # q_full[h*G + a, c*Dh:(c+1)*Dh] = x_slab @ Wq[:, c*Dh:(c+1)*Dh].
        for c in range(H):
            rows = slice(c * G, (c + 1) * G)
            q_scr[rows, :] = jnp.dot(x_slab, wq_ref[c],
                                     preferred_element_type=jnp.float32)
            k_scr[rows, :] = jnp.dot(x_slab, wk_ref[c],
                                     preferred_element_type=jnp.float32)
            v_scr[rows, :] = jnp.dot(x_slab, wv_ref[c],
                                     preferred_element_type=jnp.float32)

        qp = q_scr[...]             # (N, Dh)
        kp = k_scr[...]
        vp = v_scr[...]

        # Scores: contract last axes of both operands -> no explicit K^T.
        s = lax.dot_general(qp, kp, (((1,), (1,)), ((), ())),
                            preferred_element_type=jnp.float32) * scale
        s = s - jnp.max(s, axis=-1, keepdims=True)            # stable softmax
        p = jnp.exp(s)
        p = p * pl.reciprocal(jnp.sum(p, axis=-1, keepdims=True), approx=True)

        o_h = jnp.dot(p, vp, preferred_element_type=jnp.float32)   # (N, Dh), rows permuted

        # Head-merge folded into the output projection.
        acc = acc + jnp.dot(o_h, wo_ref[h], preferred_element_type=jnp.float32)

    # Undo the row permutation once for the whole batch element, add bias.
    out = jnp.dot(pmat_ref[...], acc, preferred_element_type=jnp.float32) + bo_ref[...]
    o_ref[...] = out.astype(o_ref.dtype)


# ---------------------------------------------------------------------------
# Wrapper
# ---------------------------------------------------------------------------
def multi_head_self_attention(x, params, nb_head):
    B, N, E = x.shape
    H = nb_head
    assert E % H == 0 and N % H == 0, (N, E, H)
    Dh = E // H
    G = N // H
    scale = 1.0 / (Dh ** 0.5)

    # One-time weight re-layout (plain JAX, outside the kernel):
    #   per-chunk column blocks of the projection weights, (H, E, Dh)
    wq_c = jnp.transpose(params["w_q"].reshape(E, H, Dh), (1, 0, 2))
    wk_c = jnp.transpose(params["w_k"].reshape(E, H, Dh), (1, 0, 2))
    wv_c = jnp.transpose(params["w_v"].reshape(E, H, Dh), (1, 0, 2))
    #   per-head row blocks of the output projection weight, (H, Dh, E)
    wo_b = params["w_o"].reshape(H, Dh, E)
    bo = params["b_o"]                                        # (1, E)

    # Row un-permutation: desired row n lives at permuted row (n%H)*G + n//H.
    n_idx = jnp.arange(N)
    pmat = jax.nn.one_hot((n_idx % H) * G + n_idx // H, N, dtype=jnp.float32)

    kernel = functools.partial(_mhsa_kernel, nb_head=H, scale=scale)

    def full(shape):
        return pl.BlockSpec(shape, lambda b: (0,) * len(shape))

    return pl.pallas_call(
        kernel,
        out_shape=jax.ShapeDtypeStruct((B, N, E), x.dtype),
        grid=(B,),
        in_specs=[
            pl.BlockSpec((None, N, E), lambda b: (b, 0, 0)),  # x (per batch)
            full((H, E, Dh)),                                 # Wq chunks
            full((H, E, Dh)),                                 # Wk chunks
            full((H, E, Dh)),                                 # Wv chunks
            full((H, Dh, E)),                                 # Wo row blocks
            full((1, E)),                                     # b_o
            full((N, N)),                                     # row-unpermute matrix
        ],
        out_specs=pl.BlockSpec((None, N, E), lambda b: (b, 0, 0)),
        scratch_shapes=[
            pltpu.VMEM((N, Dh), jnp.float32),                 # Q assembly
            pltpu.VMEM((N, Dh), jnp.float32),                 # K assembly
            pltpu.VMEM((N, Dh), jnp.float32),                 # V assembly
        ],
        compiler_params=pltpu.CompilerParams(dimension_semantics=("parallel",)),
    )(x, wq_c, wk_c, wv_c, wo_b, bo, pmat)


# ---------------------------------------------------------------------------
# Pure-JAX reference (mirrors the PyTorch forward exactly)
# ---------------------------------------------------------------------------
def reference(x, params, nb_head):
    B, N, E = x.shape
    Dh = E // nb_head
    q = (x.reshape(B * N, E) @ params["w_q"]).reshape(B, nb_head, N, Dh)
    k = (x.reshape(B * N, E) @ params["w_k"]).reshape(B, nb_head, N, Dh)
    v = (x.reshape(B * N, E) @ params["w_v"]).reshape(B, nb_head, N, Dh)
    dots = jnp.einsum("bhqd,bhkd->bhqk", q, k) / (Dh ** 0.5)
    attn = jax.nn.softmax(dots, axis=3)
    out = jnp.einsum("bhqk,bhkd->bhqd", attn, v)
    out = jnp.transpose(out, (0, 2, 1, 3)).reshape(B, N, E)
    out = out @ params["w_o"] + params["b_o"][0]
    return out


# ---------------------------------------------------------------------------
# Main
# ---------------------------------------------------------------------------
if __name__ == "__main__":
    B, N, E, H = 2, 8, 32, 4          # batch, nb_patch, embed_dim, nb_head
    dropout = 0.1                      # unused at inference

    key = jax.random.PRNGKey(0)
    kx, kq, kk, kv, ko, kb = jax.random.split(key, 6)

    x = jax.random.normal(kx, (B, N, E), dtype=jnp.float32)

    s = 1.0 / (E ** 0.5)
    params = {
        "w_q": jax.random.uniform(kq, (E, E), jnp.float32, -s, s),
        "w_k": jax.random.uniform(kk, (E, E), jnp.float32, -s, s),
        "w_v": jax.random.uniform(kv, (E, E), jnp.float32, -s, s),
        "w_o": jax.random.uniform(ko, (E, E), jnp.float32, -s, s),
        "b_o": jax.random.uniform(kb, (1, E), jnp.float32, -s, s),
    }

    out = jax.jit(multi_head_self_attention, static_argnums=2)(x, params, H)
    out = jax.block_until_ready(out)

    ref = reference(x, params, H)
    assert out.shape == (B, N, E), out.shape
    max_err = float(jnp.max(jnp.abs(out - ref)))
    # atol slightly loosened because the softmax denominator uses the EUP
    # approximate reciprocal (pl.reciprocal(..., approx=True)).
    assert jnp.allclose(out, ref, rtol=2e-3, atol=5e-3), max_err

    print("KERNEL_OK")
</pallas_src>

<mosaic_0001>
module attributes {stable_mosaic.version = 11 : i64} {
  func.func @_mhsa_kernel(%arg0: i32, %arg1: memref<1x8x32xf32, #tpu.memory_space<vmem>>, %arg2: memref<4x32x8xf32, #tpu.memory_space<vmem>>, %arg3: memref<4x32x8xf32, #tpu.memory_space<vmem>>, %arg4: memref<4x32x8xf32, #tpu.memory_space<vmem>>, %arg5: memref<4x8x32xf32, #tpu.memory_space<vmem>>, %arg6: memref<1x32xf32, #tpu.memory_space<vmem>>, %arg7: memref<8x8xf32, #tpu.memory_space<vmem>>, %arg8: memref<1x8x32xf32, #tpu.memory_space<vmem>>, %arg9: memref<8x8xf32, #tpu.memory_space<vmem>>, %arg10: memref<8x8xf32, #tpu.memory_space<vmem>>, %arg11: memref<8x8xf32, #tpu.memory_space<vmem>>) attributes {dimension_semantics = [#tpu.dimension_semantics<parallel>], iteration_bounds = array<i64: 2>, scalar_prefetch = 0 : i64, scratch_operands = 3 : i64, tpu.core_type = #tpu.core_type<tc>, window_params = [{transform_indices = @transform_0, window_bounds = array<i64: 1, 8, 32>}, {pipeline_mode = #tpu.pipeline_mode<synchronous>, transform_indices = @transform_1, window_bounds = array<i64: 4, 32, 8>}, {pipeline_mode = #tpu.pipeline_mode<synchronous>, transform_indices = @transform_2, window_bounds = array<i64: 4, 32, 8>}, {pipeline_mode = #tpu.pipeline_mode<synchronous>, transform_indices = @transform_3, window_bounds = array<i64: 4, 32, 8>}, {pipeline_mode = #tpu.pipeline_mode<synchronous>, transform_indices = @transform_4, window_bounds = array<i64: 4, 8, 32>}, {pipeline_mode = #tpu.pipeline_mode<synchronous>, transform_indices = @transform_5, window_bounds = array<i64: 1, 32>}, {pipeline_mode = #tpu.pipeline_mode<synchronous>, transform_indices = @transform_6, window_bounds = array<i64: 8, 8>}, {transform_indices = @transform_7, window_bounds = array<i64: 1, 8, 32>}]} {
    %c0 = arith.constant 0 : index
    %c0_0 = arith.constant 0 : index
    %c0_1 = arith.constant 0 : index
    %0 = vector.load %arg1[%c0, %c0_0, %c0_1] : memref<1x8x32xf32, #tpu.memory_space<vmem>>, vector<1x8x32xf32>
    %1 = vector.shape_cast %0 : vector<1x8x32xf32> to vector<8x32xf32>
    %cst = arith.constant 0.000000e+00 : f32
    %2 = vector.broadcast %cst : f32 to vector<8x32xf32>
    %3 = vector.extract_strided_slice %1 {offsets = [0, 0], sizes = [2, 32], strides = [1, 1]} : vector<8x32xf32> to vector<2x32xf32>
    %c0_2 = arith.constant 0 : index
    %c0_3 = arith.constant 0 : index
    %c0_4 = arith.constant 0 : index
    %4 = vector.load %arg2[%c0_2, %c0_3, %c0_4] : memref<4x32x8xf32, #tpu.memory_space<vmem>>, vector<1x32x8xf32>
    %5 = vector.shape_cast %4 : vector<1x32x8xf32> to vector<32x8xf32>
    %cst_5 = arith.constant dense<0.000000e+00> : vector<2x8xf32>
    %6 = tpu.matmul %3, %5, %cst_5 {dimension_numbers = #tpu.dot_dimension_numbers<[1], [0], [0], [1], [0, 0, 1, 1], [], []>} : vector<2x32xf32>, vector<32x8xf32>, vector<2x8xf32> -> vector<2x8xf32>
    %c0_6 = arith.constant 0 : index
    %c0_7 = arith.constant 0 : index
    %7 = vector.load %arg9[%c0_6, %c0_7] : memref<8x8xf32, #tpu.memory_space<vmem>>, vector<2x8xf32>
    tpu.vector_store %arg9[%c0_6, %c0_7], %6 {strides = array<i32>} : memref<8x8xf32, #tpu.memory_space<vmem>>, vector<2x8xf32>,
    %c0_8 = arith.constant 0 : index
    %c0_9 = arith.constant 0 : index
    %c0_10 = arith.constant 0 : index
    %8 = vector.load %arg3[%c0_8, %c0_9, %c0_10] : memref<4x32x8xf32, #tpu.memory_space<vmem>>, vector<1x32x8xf32>
    %9 = vector.shape_cast %8 : vector<1x32x8xf32> to vector<32x8xf32>
    %cst_11 = arith.constant dense<0.000000e+00> : vector<2x8xf32>
    %10 = tpu.matmul %3, %9, %cst_11 {dimension_numbers = #tpu.dot_dimension_numbers<[1], [0], [0], [1], [0, 0, 1, 1], [], []>} : vector<2x32xf32>, vector<32x8xf32>, vector<2x8xf32> -> vector<2x8xf32>
    %c0_12 = arith.constant 0 : index
    %c0_13 = arith.constant 0 : index
    %11 = vector.load %arg10[%c0_12, %c0_13] : memref<8x8xf32, #tpu.memory_space<vmem>>, vector<2x8xf32>
    tpu.vector_store %arg10[%c0_12, %c0_13], %10 {strides = array<i32>} : memref<8x8xf32, #tpu.memory_space<vmem>>, vector<2x8xf32>,
    %c0_14 = arith.constant 0 : index
    %c0_15 = arith.constant 0 : index
    %c0_16 = arith.constant 0 : index
    %12 = vector.load %arg4[%c0_14, %c0_15, %c0_16] : memref<4x32x8xf32, #tpu.memory_space<vmem>>, vector<1x32x8xf32>
    %13 = vector.shape_cast %12 : vector<1x32x8xf32> to vector<32x8xf32>
    %cst_17 = arith.constant dense<0.000000e+00> : vector<2x8xf32>
    %14 = tpu.matmul %3, %13, %cst_17 {dimension_numbers = #tpu.dot_dimension_numbers<[1], [0], [0], [1], [0, 0, 1, 1], [], []>} : vector<2x32xf32>, vector<32x8xf32>, vector<2x8xf32> -> vector<2x8xf32>
    %c0_18 = arith.constant 0 : index
    %c0_19 = arith.constant 0 : index
    %15 = vector.load %arg11[%c0_18, %c0_19] : memref<8x8xf32, #tpu.memory_space<vmem>>, vector<2x8xf32>
    tpu.vector_store %arg11[%c0_18, %c0_19], %14 {strides = array<i32>} : memref<8x8xf32, #tpu.memory_space<vmem>>, vector<2x8xf32>,
    %c1 = arith.constant 1 : index
    %c0_20 = arith.constant 0 : index
    %c0_21 = arith.constant 0 : index
    %16 = vector.load %arg2[%c1, %c0_20, %c0_21] : memref<4x32x8xf32, #tpu.memory_space<vmem>>, vector<1x32x8xf32>
    %17 = vector.shape_cast %16 : vector<1x32x8xf32> to vector<32x8xf32>
    %cst_22 = arith.constant dense<0.000000e+00> : vector<2x8xf32>
    %18 = tpu.matmul %3, %17, %cst_22 {dimension_numbers = #tpu.dot_dimension_numbers<[1], [0], [0], [1], [0, 0, 1, 1], [], []>} : vector<2x32xf32>, vector<32x8xf32>, vector<2x8xf32> -> vector<2x8xf32>
    %c2 = arith.constant 2 : index
    %c0_23 = arith.constant 0 : index
    %19 = vector.load %arg9[%c2, %c0_23] : memref<8x8xf32, #tpu.memory_space<vmem>>, vector<2x8xf32>
    tpu.vector_store %arg9[%c2, %c0_23], %18 {strides = array<i32>} : memref<8x8xf32, #tpu.memory_space<vmem>>, vector<2x8xf32>,
    %c1_24 = arith.constant 1 : index
    %c0_25 = arith.constant 0 : index
    %c0_26 = arith.constant 0 : index
    %20 = vector.load %arg3[%c1_24, %c0_25, %c0_26] : memref<4x32x8xf32, #tpu.memory_space<vmem>>, vector<1x32x8xf32>
    %21 = vector.shape_cast %20 : vector<1x32x8xf32> to vector<32x8xf32>
    %cst_27 = arith.constant dense<0.000000e+00> : vector<2x8xf32>
    %22 = tpu.matmul %3, %21, %cst_27 {dimension_numbers = #tpu.dot_dimension_numbers<[1], [0], [0], [1], [0, 0, 1, 1], [], []>} : vector<2x32xf32>, vector<32x8xf32>, vector<2x8xf32> -> vector<2x8xf32>
    %c2_28 = arith.constant 2 : index
    %c0_29 = arith.constant 0 : index
    %23 = vector.load %arg10[%c2_28, %c0_29] : memref<8x8xf32, #tpu.memory_space<vmem>>, vector<2x8xf32>
    tpu.vector_store %arg10[%c2_28, %c0_29], %22 {strides = array<i32>} : memref<8x8xf32, #tpu.memory_space<vmem>>, vector<2x8xf32>,
    %c1_30 = arith.constant 1 : index
    %c0_31 = arith.constant 0 : index
    %c0_32 = arith.constant 0 : index
    %24 = vector.load %arg4[%c1_30, %c0_31, %c0_32] : memref<4x32x8xf32, #tpu.memory_space<vmem>>, vector<1x32x8xf32>
    %25 = vector.shape_cast %24 : vector<1x32x8xf32> to vector<32x8xf32>
    %cst_33 = arith.constant dense<0.000000e+00> : vector<2x8xf32>
    %26 = tpu.matmul %3, %25, %cst_33 {dimension_numbers = #tpu.dot_dimension_numbers<[1], [0], [0], [1], [0, 0, 1, 1], [], []>} : vector<2x32xf32>, vector<32x8xf32>, vector<2x8xf32> -> vector<2x8xf32>
    %c2_34 = arith.constant 2 : index
    %c0_35 = arith.constant 0 : index
    %27 = vector.load %arg11[%c2_34, %c0_35] : memref<8x8xf32, #tpu.memory_space<vmem>>, vector<2x8xf32>
    tpu.vector_store %arg11[%c2_34, %c0_35], %26 {strides = array<i32>} : memref<8x8xf32, #tpu.memory_space<vmem>>, vector<2x8xf32>,
    %c2_36 = arith.constant 2 : index
    %c0_37 = arith.constant 0 : index
    %c0_38 = arith.constant 0 : index
    %28 = vector.load %arg2[%c2_36, %c0_37, %c0_38] : memref<4x32x8xf32, #tpu.memory_space<vmem>>, vector<1x32x8xf32>
    %29 = vector.shape_cast %28 : vector<1x32x8xf32> to vector<32x8xf32>
    %cst_39 = arith.constant dense<0.000000e+00> : vector<2x8xf32>
    %30 = tpu.matmul %3, %29, %cst_39 {dimension_numbers = #tpu.dot_dimension_numbers<[1], [0], [0], [1], [0, 0, 1, 1], [], []>} : vector<2x32xf32>, vector<32x8xf32>, vector<2x8xf32> -> vector<2x8xf32>
    %c4 = arith.constant 4 : index
    %c0_40 = arith.constant 0 : index
    %31 = vector.load %arg9[%c4, %c0_40] : memref<8x8xf32, #tpu.memory_space<vmem>>, vector<2x8xf32>
    tpu.vector_store %arg9[%c4, %c0_40], %30 {strides = array<i32>} : memref<8x8xf32, #tpu.memory_space<vmem>>, vector<2x8xf32>,
    %c2_41 = arith.constant 2 : index
    %c0_42 = arith.constant 0 : index
    %c0_43 = arith.constant 0 : index
    %32 = vector.load %arg3[%c2_41, %c0_42, %c0_43] : memref<4x32x8xf32, #tpu.memory_space<vmem>>, vector<1x32x8xf32>
    %33 = vector.shape_cast %32 : vector<1x32x8xf32> to vector<32x8xf32>
    %cst_44 = arith.constant dense<0.000000e+00> : vector<2x8xf32>
    %34 = tpu.matmul %3, %33, %cst_44 {dimension_numbers = #tpu.dot_dimension_numbers<[1], [0], [0], [1], [0, 0, 1, 1], [], []>} : vector<2x32xf32>, vector<32x8xf32>, vector<2x8xf32> -> vector<2x8xf32>
    %c4_45 = arith.constant 4 : index
    %c0_46 = arith.constant 0 : index
    %35 = vector.load %arg10[%c4_45, %c0_46] : memref<8x8xf32, #tpu.memory_space<vmem>>, vector<2x8xf32>
    tpu.vector_store %arg10[%c4_45, %c0_46], %34 {strides = array<i32>} : memref<8x8xf32, #tpu.memory_space<vmem>>, vector<2x8xf32>,
    %c2_47 = arith.constant 2 : index
    %c0_48 = arith.constant 0 : index
    %c0_49 = arith.constant 0 : index
    %36 = vector.load %arg4[%c2_47, %c0_48, %c0_49] : memref<4x32x8xf32, #tpu.memory_space<vmem>>, vector<1x32x8xf32>
    %37 = vector.shape_cast %36 : vector<1x32x8xf32> to vector<32x8xf32>
    %cst_50 = arith.constant dense<0.000000e+00> : vector<2x8xf32>
    %38 = tpu.matmul %3, %37, %cst_50 {dimension_numbers = #tpu.dot_dimension_numbers<[1], [0], [0], [1], [0, 0, 1, 1], [], []>} : vector<2x32xf32>, vector<32x8xf32>, vector<2x8xf32> -> vector<2x8xf32>
    %c4_51 = arith.constant 4 : index
    %c0_52 = arith.constant 0 : index
    %39 = vector.load %arg11[%c4_51, %c0_52] : memref<8x8xf32, #tpu.memory_space<vmem>>, vector<2x8xf32>
    tpu.vector_store %arg11[%c4_51, %c0_52], %38 {strides = array<i32>} : memref<8x8xf32, #tpu.memory_space<vmem>>, vector<2x8xf32>,
    %c3 = arith.constant 3 : index
    %c0_53 = arith.constant 0 : index
    %c0_54 = arith.constant 0 : index
    %40 = vector.load %arg2[%c3, %c0_53, %c0_54] : memref<4x32x8xf32, #tpu.memory_space<vmem>>, vector<1x32x8xf32>
    %41 = vector.shape_cast %40 : vector<1x32x8xf32> to vector<32x8xf32>
    %cst_55 = arith.constant dense<0.000000e+00> : vector<2x8xf32>
    %42 = tpu.matmul %3, %41, %cst_55 {dimension_numbers = #tpu.dot_dimension_numbers<[1], [0], [0], [1], [0, 0, 1, 1], [], []>} : vector<2x32xf32>, vector<32x8xf32>, vector<2x8xf32> -> vector<2x8xf32>
    %c6 = arith.constant 6 : index
    %c0_56 = arith.constant 0 : index
    %43 = vector.load %arg9[%c6, %c0_56] : memref<8x8xf32, #tpu.memory_space<vmem>>, vector<2x8xf32>
    tpu.vector_store %arg9[%c6, %c0_56], %42 {strides = array<i32>} : memref<8x8xf32, #tpu.memory_space<vmem>>, vector<2x8xf32>,
    %c3_57 = arith.constant 3 : index
    %c0_58 = arith.constant 0 : index
    %c0_59 = arith.constant 0 : index
    %44 = vector.load %arg3[%c3_57, %c0_58, %c0_59] : memref<4x32x8xf32, #tpu.memory_space<vmem>>, vector<1x32x8xf32>
    %45 = vector.shape_cast %44 : vector<1x32x8xf32> to vector<32x8xf32>
    %cst_60 = arith.constant dense<0.000000e+00> : vector<2x8xf32>
    %46 = tpu.matmul %3, %45, %cst_60 {dimension_numbers = #tpu.dot_dimension_numbers<[1], [0], [0], [1], [0, 0, 1, 1], [], []>} : vector<2x32xf32>, vector<32x8xf32>, vector<2x8xf32> -> vector<2x8xf32>
    %c6_61 = arith.constant 6 : index
    %c0_62 = arith.constant 0 : index
    %47 = vector.load %arg10[%c6_61, %c0_62] : memref<8x8xf32, #tpu.memory_space<vmem>>, vector<2x8xf32>
    tpu.vector_store %arg10[%c6_61, %c0_62], %46 {strides = array<i32>} : memref<8x8xf32, #tpu.memory_space<vmem>>, vector<2x8xf32>,
    %c3_63 = arith.constant 3 : index
    %c0_64 = arith.constant 0 : index
    %c0_65 = arith.constant 0 : index
    %48 = vector.load %arg4[%c3_63, %c0_64, %c0_65] : memref<4x32x8xf32, #tpu.memory_space<vmem>>, vector<1x32x8xf32>
    %49 = vector.shape_cast %48 : vector<1x32x8xf32> to vector<32x8xf32>
    %cst_66 = arith.constant dense<0.000000e+00> : vector<2x8xf32>
    %50 = tpu.matmul %3, %49, %cst_66 {dimension_numbers = #tpu.dot_dimension_numbers<[1], [0], [0], [1], [0, 0, 1, 1], [], []>} : vector<2x32xf32>, vector<32x8xf32>, vector<2x8xf32> -> vector<2x8xf32>
    %c6_67 = arith.constant 6 : index
    %c0_68 = arith.constant 0 : index
    %51 = vector.load %arg11[%c6_67, %c0_68] : memref<8x8xf32, #tpu.memory_space<vmem>>, vector<2x8xf32>
    tpu.vector_store %arg11[%c6_67, %c0_68], %50 {strides = array<i32>} : memref<8x8xf32, #tpu.memory_space<vmem>>, vector<2x8xf32>,
    %c0_69 = arith.constant 0 : index
    %c0_70 = arith.constant 0 : index
    %52 = vector.load %arg9[%c0_69, %c0_70] : memref<8x8xf32, #tpu.memory_space<vmem>>, vector<8x8xf32>
    %c0_71 = arith.constant 0 : index
    %c0_72 = arith.constant 0 : index
    %53 = vector.load %arg10[%c0_71, %c0_72] : memref<8x8xf32, #tpu.memory_space<vmem>>, vector<8x8xf32>
    %c0_73 = arith.constant 0 : index
    %c0_74 = arith.constant 0 : index
    %54 = vector.load %arg11[%c0_73, %c0_74] : memref<8x8xf32, #tpu.memory_space<vmem>>, vector<8x8xf32>
    %cst_75 = arith.constant dense<0.000000e+00> : vector<8x8xf32>
    %55 = tpu.matmul %52, %53, %cst_75 {dimension_numbers = #tpu.dot_dimension_numbers<[1], [1], [0], [0], [0, 0, 1, 0], [], []>} : vector<8x8xf32>, vector<8x8xf32>, vector<8x8xf32> -> vector<8x8xf32>
    %cst_76 = arith.constant 0.353553385 : f32
    %56 = vector.broadcast %cst_76 : f32 to vector<8x8xf32>
    %57 = arith.mulf %55, %56 : vector<8x8xf32>
    %cst_77 = arith.constant dense<0xFF800000> : vector<8xf32>
    %58 = vector.multi_reduction <maximumf>, %57, %cst_77 [1] : vector<8x8xf32> to vector<8xf32>
    %59 = vector.shape_cast %58 : vector<8xf32> to vector<8x1xf32>
    %60 = vector.broadcast %59 : vector<8x1xf32> to vector<8x8xf32>
    %61 = arith.subf %57, %60 : vector<8x8xf32>
    %62 = math.exp %61 : vector<8x8xf32>
    %cst_78 = arith.constant dense<0.000000e+00> : vector<8xf32>
    %63 = vector.multi_reduction <add>, %62, %cst_78 [1] : vector<8x8xf32> to vector<8xf32>
    %64 = vector.shape_cast %63 : vector<8xf32> to vector<8x1xf32>
    %65 = tpu.reciprocal %64 {approx = true} : vector<8x1xf32> -> vector<8x1xf32>
    %66 = vector.broadcast %65 : vector<8x1xf32> to vector<8x8xf32>
    %67 = arith.mulf %62, %66 : vector<8x8xf32>
    %cst_79 = arith.constant dense<0.000000e+00> : vector<8x8xf32>
    %68 = tpu.matmul %67, %54, %cst_79 {dimension_numbers = #tpu.dot_dimension_numbers<[1], [0], [0], [1], [0, 0, 1, 1], [], []>} : vector<8x8xf32>, vector<8x8xf32>, vector<8x8xf32> -> vector<8x8xf32>
    %c0_80 = arith.constant 0 : index
    %c0_81 = arith.constant 0 : index
    %c0_82 = arith.constant 0 : index
    %69 = vector.load %arg5[%c0_80, %c0_81, %c0_82] : memref<4x8x32xf32, #tpu.memory_space<vmem>>, vector<1x8x32xf32>
    %70 = vector.shape_cast %69 : vector<1x8x32xf32> to vector<8x32xf32>
    %cst_83 = arith.constant dense<0.000000e+00> : vector<8x32xf32>
    %71 = tpu.matmul %68, %70, %cst_83 {dimension_numbers = #tpu.dot_dimension_numbers<[1], [0], [0], [1], [0, 0, 1, 1], [], []>} : vector<8x8xf32>, vector<8x32xf32>, vector<8x32xf32> -> vector<8x32xf32>
    %72 = arith.addf %2, %71 : vector<8x32xf32>
    %73 = vector.extract_strided_slice %1 {offsets = [2, 0], sizes = [2, 32], strides = [1, 1]} : vector<8x32xf32> to vector<2x32xf32>
    %c0_84 = arith.constant 0 : index
    %c0_85 = arith.constant 0 : index
    %c0_86 = arith.constant 0 : index
    %74 = vector.load %arg2[%c0_84, %c0_85, %c0_86] : memref<4x32x8xf32, #tpu.memory_space<vmem>>, vector<1x32x8xf32>
    %75 = vector.shape_cast %74 : vector<1x32x8xf32> to vector<32x8xf32>
    %cst_87 = arith.constant dense<0.000000e+00> : vector<2x8xf32>
    %76 = tpu.matmul %73, %75, %cst_87 {dimension_numbers = #tpu.dot_dimension_numbers<[1], [0], [0], [1], [0, 0, 1, 1], [], []>} : vector<2x32xf32>, vector<32x8xf32>, vector<2x8xf32> -> vector<2x8xf32>
    %c0_88 = arith.constant 0 : index
    %c0_89 = arith.constant 0 : index
    %77 = vector.load %arg9[%c0_88, %c0_89] : memref<8x8xf32, #tpu.memory_space<vmem>>, vector<2x8xf32>
    tpu.vector_store %arg9[%c0_88, %c0_89], %76 {strides = array<i32>} : memref<8x8xf32, #tpu.memory_space<vmem>>, vector<2x8xf32>,
    %c0_90 = arith.constant 0 : index
    %c0_91 = arith.constant 0 : index
    %c0_92 = arith.constant 0 : index
    %78 = vector.load %arg3[%c0_90, %c0_91, %c0_92] : memref<4x32x8xf32, #tpu.memory_space<vmem>>, vector<1x32x8xf32>
    %79 = vector.shape_cast %78 : vector<1x32x8xf32> to vector<32x8xf32>
    %cst_93 = arith.constant dense<0.000000e+00> : vector<2x8xf32>
    %80 = tpu.matmul %73, %79, %cst_93 {dimension_numbers = #tpu.dot_dimension_numbers<[1], [0], [0], [1], [0, 0, 1, 1], [], []>} : vector<2x32xf32>, vector<32x8xf32>, vector<2x8xf32> -> vector<2x8xf32>
    %c0_94 = arith.constant 0 : index
    %c0_95 = arith.constant 0 : index
    %81 = vector.load %arg10[%c0_94, %c0_95] : memref<8x8xf32, #tpu.memory_space<vmem>>, vector<2x8xf32>
    tpu.vector_store %arg10[%c0_94, %c0_95], %80 {strides = array<i32>} : memref<8x8xf32, #tpu.memory_space<vmem>>, vector<2x8xf32>,
    %c0_96 = arith.constant 0 : index
    %c0_97 = arith.constant 0 : index
    %c0_98 = arith.constant 0 : index
    %82 = vector.load %arg4[%c0_96, %c0_97, %c0_98] : memref<4x32x8xf32, #tpu.memory_space<vmem>>, vector<1x32x8xf32>
    %83 = vector.shape_cast %82 : vector<1x32x8xf32> to vector<32x8xf32>
    %cst_99 = arith.constant dense<0.000000e+00> : vector<2x8xf32>
    %84 = tpu.matmul %73, %83, %cst_99 {dimension_numbers = #tpu.dot_dimension_numbers<[1], [0], [0], [1], [0, 0, 1, 1], [], []>} : vector<2x32xf32>, vector<32x8xf32>, vector<2x8xf32> -> vector<2x8xf32>
    %c0_100 = arith.constant 0 : index
    %c0_101 = arith.constant 0 : index
    %85 = vector.load %arg11[%c0_100, %c0_101] : memref<8x8xf32, #tpu.memory_space<vmem>>, vector<2x8xf32>
    tpu.vector_store %arg11[%c0_100, %c0_101], %84 {strides = array<i32>} : memref<8x8xf32, #tpu.memory_space<vmem>>, vector<2x8xf32>,
    %c1_102 = arith.constant 1 : index
    %c0_103 = arith.constant 0 : index
    %c0_104 = arith.constant 0 : index
    %86 = vector.load %arg2[%c1_102, %c0_103, %c0_104] : memref<4x32x8xf32, #tpu.memory_space<vmem>>, vector<1x32x8xf32>
    %87 = vector.shape_cast %86 : vector<1x32x8xf32> to vector<32x8xf32>
    %cst_105 = arith.constant dense<0.000000e+00> : vector<2x8xf32>
    %88 = tpu.matmul %73, %87, %cst_105 {dimension_numbers = #tpu.dot_dimension_numbers<[1], [0], [0], [1], [0, 0, 1, 1], [], []>} : vector<2x32xf32>, vector<32x8xf32>, vector<2x8xf32> -> vector<2x8xf32>
    %c2_106 = arith.constant 2 : index
    %c0_107 = arith.constant 0 : index
    %89 = vector.load %arg9[%c2_106, %c0_107] : memref<8x8xf32, #tpu.memory_space<vmem>>, vector<2x8xf32>
    tpu.vector_store %arg9[%c2_106, %c0_107], %88 {strides = array<i32>} : memref<8x8xf32, #tpu.memory_space<vmem>>, vector<2x8xf32>,
    %c1_108 = arith.constant 1 : index
    %c0_109 = arith.constant 0 : index
    %c0_110 = arith.constant 0 : index
    %90 = vector.load %arg3[%c1_108, %c0_109, %c0_110] : memref<4x32x8xf32, #tpu.memory_space<vmem>>, vector<1x32x8xf32>
    %91 = vector.shape_cast %90 : vector<1x32x8xf32> to vector<32x8xf32>
    %cst_111 = arith.constant dense<0.000000e+00> : vector<2x8xf32>
    %92 = tpu.matmul %73, %91, %cst_111 {dimension_numbers = #tpu.dot_dimension_numbers<[1], [0], [0], [1], [0, 0, 1, 1], [], []>} : vector<2x32xf32>, vector<32x8xf32>, vector<2x8xf32> -> vector<2x8xf32>
    %c2_112 = arith.constant 2 : index
    %c0_113 = arith.constant 0 : index
    %93 = vector.load %arg10[%c2_112, %c0_113] : memref<8x8xf32, #tpu.memory_space<vmem>>, vector<2x8xf32>
    tpu.vector_store %arg10[%c2_112, %c0_113], %92 {strides = array<i32>} : memref<8x8xf32, #tpu.memory_space<vmem>>, vector<2x8xf32>,
    %c1_114 = arith.constant 1 : index
    %c0_115 = arith.constant 0 : index
    %c0_116 = arith.constant 0 : index
    %94 = vector.load %arg4[%c1_114, %c0_115, %c0_116] : memref<4x32x8xf32, #tpu.memory_space<vmem>>, vector<1x32x8xf32>
    %95 = vector.shape_cast %94 : vector<1x32x8xf32> to vector<32x8xf32>
    %cst_117 = arith.constant dense<0.000000e+00> : vector<2x8xf32>
    %96 = tpu.matmul %73, %95, %cst_117 {dimension_numbers = #tpu.dot_dimension_numbers<[1], [0], [0], [1], [0, 0, 1, 1], [], []>} : vector<2x32xf32>, vector<32x8xf32>, vector<2x8xf32> -> vector<2x8xf32>
    %c2_118 = arith.constant 2 : index
    %c0_119 = arith.constant 0 : index
    %97 = vector.load %arg11[%c2_118, %c0_119] : memref<8x8xf32, #tpu.memory_space<vmem>>, vector<2x8xf32>
    tpu.vector_store %arg11[%c2_118, %c0_119], %96 {strides = array<i32>} : memref<8x8xf32, #tpu.memory_space<vmem>>, vector<2x8xf32>,
    %c2_120 = arith.constant 2 : index
    %c0_121 = arith.constant 0 : index
    %c0_122 = arith.constant 0 : index
    %98 = vector.load %arg2[%c2_120, %c0_121, %c0_122] : memref<4x32x8xf32, #tpu.memory_space<vmem>>, vector<1x32x8xf32>
    %99 = vector.shape_cast %98 : vector<1x32x8xf32> to vector<32x8xf32>
    %cst_123 = arith.constant dense<0.000000e+00> : vector<2x8xf32>
    %100 = tpu.matmul %73, %99, %cst_123 {dimension_numbers = #tpu.dot_dimension_numbers<[1], [0], [0], [1], [0, 0, 1, 1], [], []>} : vector<2x32xf32>, vector<32x8xf32>, vector<2x8xf32> -> vector<2x8xf32>
    %c4_124 = arith.constant 4 : index
    %c0_125 = arith.constant 0 : index
    %101 = vector.load %arg9[%c4_124, %c0_125] : memref<8x8xf32, #tpu.memory_space<vmem>>, vector<2x8xf32>
    tpu.vector_store %arg9[%c4_124, %c0_125], %100 {strides = array<i32>} : memref<8x8xf32, #tpu.memory_space<vmem>>, vector<2x8xf32>,
    %c2_126 = arith.constant 2 : index
    %c0_127 = arith.constant 0 : index
    %c0_128 = arith.constant 0 : index
    %102 = vector.load %arg3[%c2_126, %c0_127, %c0_128] : memref<4x32x8xf32, #tpu.memory_space<vmem>>, vector<1x32x8xf32>
    %103 = vector.shape_cast %102 : vector<1x32x8xf32> to vector<32x8xf32>
    %cst_129 = arith.constant dense<0.000000e+00> : vector<2x8xf32>
    %104 = tpu.matmul %73, %103, %cst_129 {dimension_numbers = #tpu.dot_dimension_numbers<[1], [0], [0], [1], [0, 0, 1, 1], [], []>} : vector<2x32xf32>, vector<32x8xf32>, vector<2x8xf32> -> vector<2x8xf32>
    %c4_130 = arith.constant 4 : index
    %c0_131 = arith.constant 0 : index
    %105 = vector.load %arg10[%c4_130, %c0_131] : memref<8x8xf32, #tpu.memory_space<vmem>>, vector<2x8xf32>
    tpu.vector_store %arg10[%c4_130, %c0_131], %104 {strides = array<i32>} : memref<8x8xf32, #tpu.memory_space<vmem>>, vector<2x8xf32>,
    %c2_132 = arith.constant 2 : index
    %c0_133 = arith.constant 0 : index
    %c0_134 = arith.constant 0 : index
    %106 = vector.load %arg4[%c2_132, %c0_133, %c0_134] : memref<4x32x8xf32, #tpu.memory_space<vmem>>, vector<1x32x8xf32>
    %107 = vector.shape_cast %106 : vector<1x32x8xf32> to vector<32x8xf32>
    %cst_135 = arith.constant dense<0.000000e+00> : vector<2x8xf32>
    %108 = tpu.matmul %73, %107, %cst_135 {dimension_numbers = #tpu.dot_dimension_numbers<[1], [0], [0], [1], [0, 0, 1, 1], [], []>} : vector<2x32xf32>, vector<32x8xf32>, vector<2x8xf32> -> vector<2x8xf32>
    %c4_136 = arith.constant 4 : index
    %c0_137 = arith.constant 0 : index
    %109 = vector.load %arg11[%c4_136, %c0_137] : memref<8x8xf32, #tpu.memory_space<vmem>>, vector<2x8xf32>
    tpu.vector_store %arg11[%c4_136, %c0_137], %108 {strides = array<i32>} : memref<8x8xf32, #tpu.memory_space<vmem>>, vector<2x8xf32>,
    %c3_138 = arith.constant 3 : index
    %c0_139 = arith.constant 0 : index
    %c0_140 = arith.constant 0 : index
    %110 = vector.load %arg2[%c3_138, %c0_139, %c0_140] : memref<4x32x8xf32, #tpu.memory_space<vmem>>, vector<1x32x8xf32>
    %111 = vector.shape_cast %110 : vector<1x32x8xf32> to vector<32x8xf32>
    %cst_141 = arith.constant dense<0.000000e+00> : vector<2x8xf32>
    %112 = tpu.matmul %73, %111, %cst_141 {dimension_numbers = #tpu.dot_dimension_numbers<[1], [0], [0], [1], [0, 0, 1, 1], [], []>} : vector<2x32xf32>, vector<32x8xf32>, vector<2x8xf32> -> vector<2x8xf32>
    %c6_142 = arith.constant 6 : index
    %c0_143 = arith.constant 0 : index
    %113 = vector.load %arg9[%c6_142, %c0_143] : memref<8x8xf32, #tpu.memory_space<vmem>>, vector<2x8xf32>
    tpu.vector_store %arg9[%c6_142, %c0_143], %112 {strides = array<i32>} : memref<8x8xf32, #tpu.memory_space<vmem>>, vector<2x8xf32>,
    %c3_144 = arith.constant 3 : index
    %c0_145 = arith.constant 0 : index
    %c0_146 = arith.constant 0 : index
    %114 = vector.load %arg3[%c3_144, %c0_145, %c0_146] : memref<4x32x8xf32, #tpu.memory_space<vmem>>, vector<1x32x8xf32>
    %115 = vector.shape_cast %114 : vector<1x32x8xf32> to vector<32x8xf32>
    %cst_147 = arith.constant dense<0.000000e+00> : vector<2x8xf32>
    %116 = tpu.matmul %73, %115, %cst_147 {dimension_numbers = #tpu.dot_dimension_numbers<[1], [0], [0], [1], [0, 0, 1, 1], [], []>} : vector<2x32xf32>, vector<32x8xf32>, vector<2x8xf32> -> vector<2x8xf32>
    %c6_148 = arith.constant 6 : index
    %c0_149 = arith.constant 0 : index
    %117 = vector.load %arg10[%c6_148, %c0_149] : memref<8x8xf32, #tpu.memory_space<vmem>>, vector<2x8xf32>
    tpu.vector_store %arg10[%c6_148, %c0_149], %116 {strides = array<i32>} : memref<8x8xf32, #tpu.memory_space<vmem>>, vector<2x8xf32>,
    %c3_150 = arith.constant 3 : index
    %c0_151 = arith.constant 0 : index
    %c0_152 = arith.constant 0 : index
    %118 = vector.load %arg4[%c3_150, %c0_151, %c0_152] : memref<4x32x8xf32, #tpu.memory_space<vmem>>, vector<1x32x8xf32>
    %119 = vector.shape_cast %118 : vector<1x32x8xf32> to vector<32x8xf32>
    %cst_153 = arith.constant dense<0.000000e+00> : vector<2x8xf32>
    %120 = tpu.matmul %73, %119, %cst_153 {dimension_numbers = #tpu.dot_dimension_numbers<[1], [0], [0], [1], [0, 0, 1, 1], [], []>} : vector<2x32xf32>, vector<32x8xf32>, vector<2x8xf32> -> vector<2x8xf32>
    %c6_154 = arith.constant 6 : index
    %c0_155 = arith.constant 0 : index
    %121 = vector.load %arg11[%c6_154, %c0_155] : memref<8x8xf32, #tpu.memory_space<vmem>>, vector<2x8xf32>
    tpu.vector_store %arg11[%c6_154, %c0_155], %120 {strides = array<i32>} : memref<8x8xf32, #tpu.memory_space<vmem>>, vector<2x8xf32>,
    %c0_156 = arith.constant 0 : index
    %c0_157 = arith.constant 0 : index
    %122 = vector.load %arg9[%c0_156, %c0_157] : memref<8x8xf32, #tpu.memory_space<vmem>>, vector<8x8xf32>
    %c0_158 = arith.constant 0 : index
    %c0_159 = arith.constant 0 : index
    %123 = vector.load %arg10[%c0_158, %c0_159] : memref<8x8xf32, #tpu.memory_space<vmem>>, vector<8x8xf32>
    %c0_160 = arith.constant 0 : index
    %c0_161 = arith.constant 0 : index
    %124 = vector.load %arg11[%c0_160, %c0_161] : memref<8x8xf32, #tpu.memory_space<vmem>>, vector<8x8xf32>
    %cst_162 = arith.constant dense<0.000000e+00> : vector<8x8xf32>
    %125 = tpu.matmul %122, %123, %cst_162 {dimension_numbers = #tpu.dot_dimension_numbers<[1], [1], [0], [0], [0, 0, 1, 0], [], []>} : vector<8x8xf32>, vector<8x8xf32>, vector<8x8xf32> -> vector<8x8xf32>
    %cst_163 = arith.constant 0.353553385 : f32
    %126 = vector.broadcast %cst_163 : f32 to vector<8x8xf32>
    %127 = arith.mulf %125, %126 : vector<8x8xf32>
    %cst_164 = arith.constant dense<0xFF800000> : vector<8xf32>
    %128 = vector.multi_reduction <maximumf>, %127, %cst_164 [1] : vector<8x8xf32> to vector<8xf32>
    %129 = vector.shape_cast %128 : vector<8xf32> to vector<8x1xf32>
    %130 = vector.broadcast %129 : vector<8x1xf32> to vector<8x8xf32>
    %131 = arith.subf %127, %130 : vector<8x8xf32>
    %132 = math.exp %131 : vector<8x8xf32>
    %cst_165 = arith.constant dense<0.000000e+00> : vector<8xf32>
    %133 = vector.multi_reduction <add>, %132, %cst_165 [1] : vector<8x8xf32> to vector<8xf32>
    %134 = vector.shape_cast %133 : vector<8xf32> to vector<8x1xf32>
    %135 = tpu.reciprocal %134 {approx = true} : vector<8x1xf32> -> vector<8x1xf32>
    %136 = vector.broadcast %135 : vector<8x1xf32> to vector<8x8xf32>
    %137 = arith.mulf %132, %136 : vector<8x8xf32>
    %cst_166 = arith.constant dense<0.000000e+00> : vector<8x8xf32>
    %138 = tpu.matmul %137, %124, %cst_166 {dimension_numbers = #tpu.dot_dimension_numbers<[1], [0], [0], [1], [0, 0, 1, 1], [], []>} : vector<8x8xf32>, vector<8x8xf32>, vector<8x8xf32> -> vector<8x8xf32>
    %c1_167 = arith.constant 1 : index
    %c0_168 = arith.constant 0 : index
    %c0_169 = arith.constant 0 : index
    %139 = vector.load %arg5[%c1_167, %c0_168, %c0_169] : memref<4x8x32xf32, #tpu.memory_space<vmem>>, vector<1x8x32xf32>
    %140 = vector.shape_cast %139 : vector<1x8x32xf32> to vector<8x32xf32>
    %cst_170 = arith.constant dense<0.000000e+00> : vector<8x32xf32>
    %141 = tpu.matmul %138, %140, %cst_170 {dimension_numbers = #tpu.dot_dimension_numbers<[1], [0], [0], [1], [0, 0, 1, 1], [], []>} : vector<8x8xf32>, vector<8x32xf32>, vector<8x32xf32> -> vector<8x32xf32>
    %142 = arith.addf %72, %141 : vector<8x32xf32>
    %143 = vector.extract_strided_slice %1 {offsets = [4, 0], sizes = [2, 32], strides = [1, 1]} : vector<8x32xf32> to vector<2x32xf32>
    %c0_171 = arith.constant 0 : index
    %c0_172 = arith.constant 0 : index
    %c0_173 = arith.constant 0 : index
    %144 = vector.load %arg2[%c0_171, %c0_172, %c0_173] : memref<4x32x8xf32, #tpu.memory_space<vmem>>, vector<1x32x8xf32>
    %145 = vector.shape_cast %144 : vector<1x32x8xf32> to vector<32x8xf32>
    %cst_174 = arith.constant dense<0.000000e+00> : vector<2x8xf32>
    %146 = tpu.matmul %143, %145, %cst_174 {dimension_numbers = #tpu.dot_dimension_numbers<[1], [0], [0], [1], [0, 0, 1, 1], [], []>} : vector<2x32xf32>, vector<32x8xf32>, vector<2x8xf32> -> vector<2x8xf32>
    %c0_175 = arith.constant 0 : index
    %c0_176 = arith.constant 0 : index
    %147 = vector.load %arg9[%c0_175, %c0_176] : memref<8x8xf32, #tpu.memory_space<vmem>>, vector<2x8xf32>
    tpu.vector_store %arg9[%c0_175, %c0_176], %146 {strides = array<i32>} : memref<8x8xf32, #tpu.memory_space<vmem>>, vector<2x8xf32>,
    %c0_177 = arith.constant 0 : index
    %c0_178 = arith.constant 0 : index
    %c0_179 = arith.constant 0 : index
    %148 = vector.load %arg3[%c0_177, %c0_178, %c0_179] : memref<4x32x8xf32, #tpu.memory_space<vmem>>, vector<1x32x8xf32>
    %149 = vector.shape_cast %148 : vector<1x32x8xf32> to vector<32x8xf32>
    %cst_180 = arith.constant dense<0.000000e+00> : vector<2x8xf32>
    %150 = tpu.matmul %143, %149, %cst_180 {dimension_numbers = #tpu.dot_dimension_numbers<[1], [0], [0], [1], [0, 0, 1, 1], [], []>} : vector<2x32xf32>, vector<32x8xf32>, vector<2x8xf32> -> vector<2x8xf32>
    %c0_181 = arith.constant 0 : index
    %c0_182 = arith.constant 0 : index
    %151 = vector.load %arg10[%c0_181, %c0_182] : memref<8x8xf32, #tpu.memory_space<vmem>>, vector<2x8xf32>
    tpu.vector_store %arg10[%c0_181, %c0_182], %150 {strides = array<i32>} : memref<8x8xf32, #tpu.memory_space<vmem>>, vector<2x8xf32>,
    %c0_183 = arith.constant 0 : index
    %c0_184 = arith.constant 0 : index
    %c0_185 = arith.constant 0 : index
    %152 = vector.load %arg4[%c0_183, %c0_184, %c0_185] : memref<4x32x8xf32, #tpu.memory_space<vmem>>, vector<1x32x8xf32>
    %153 = vector.shape_cast %152 : vector<1x32x8xf32> to vector<32x8xf32>
    %cst_186 = arith.constant dense<0.000000e+00> : vector<2x8xf32>
    %154 = tpu.matmul %143, %153, %cst_186 {dimension_numbers = #tpu.dot_dimension_numbers<[1], [0], [0], [1], [0, 0, 1, 1], [], []>} : vector<2x32xf32>, vector<32x8xf32>, vector<2x8xf32> -> vector<2x8xf32>
    %c0_187 = arith.constant 0 : index
    %c0_188 = arith.constant 0 : index
    %155 = vector.load %arg11[%c0_187, %c0_188] : memref<8x8xf32, #tpu.memory_space<vmem>>, vector<2x8xf32>
    tpu.vector_store %arg11[%c0_187, %c0_188], %154 {strides = array<i32>} : memref<8x8xf32, #tpu.memory_space<vmem>>, vector<2x8xf32>,
    %c1_189 = arith.constant 1 : index
    %c0_190 = arith.constant 0 : index
    %c0_191 = arith.constant 0 : index
    %156 = vector.load %arg2[%c1_189, %c0_190, %c0_191] : memref<4x32x8xf32, #tpu.memory_space<vmem>>, vector<1x32x8xf32>
    %157 = vector.shape_cast %156 : vector<1x32x8xf32> to vector<32x8xf32>
    %cst_192 = arith.constant dense<0.000000e+00> : vector<2x8xf32>
    %158 = tpu.matmul %143, %157, %cst_192 {dimension_numbers = #tpu.dot_dimension_numbers<[1], [0], [0], [1], [0, 0, 1, 1], [], []>} : vector<2x32xf32>, vector<32x8xf32>, vector<2x8xf32> -> vector<2x8xf32>
    %c2_193 = arith.constant 2 : index
    %c0_194 = arith.constant 0 : index
    %159 = vector.load %arg9[%c2_193, %c0_194] : memref<8x8xf32, #tpu.memory_space<vmem>>, vector<2x8xf32>
    tpu.vector_store %arg9[%c2_193, %c0_194], %158 {strides = array<i32>} : memref<8x8xf32, #tpu.memory_space<vmem>>, vector<2x8xf32>,
    %c1_195 = arith.constant 1 : index
    %c0_196 = arith.constant 0 : index
    %c0_197 = arith.constant 0 : index
    %160 = vector.load %arg3[%c1_195, %c0_196, %c0_197] : memref<4x32x8xf32, #tpu.memory_space<vmem>>, vector<1x32x8xf32>
    %161 = vector.shape_cast %160 : vector<1x32x8xf32> to vector<32x8xf32>
    %cst_198 = arith.constant dense<0.000000e+00> : vector<2x8xf32>
    %162 = tpu.matmul %143, %161, %cst_198 {dimension_numbers = #tpu.dot_dimension_numbers<[1], [0], [0], [1], [0, 0, 1, 1], [], []>} : vector<2x32xf32>, vector<32x8xf32>, vector<2x8xf32> -> vector<2x8xf32>
    %c2_199 = arith.constant 2 : index
    %c0_200 = arith.constant 0 : index
    %163 = vector.load %arg10[%c2_199, %c0_200] : memref<8x8xf32, #tpu.memory_space<vmem>>, vector<2x8xf32>
    tpu.vector_store %arg10[%c2_199, %c0_200], %162 {strides = array<i32>} : memref<8x8xf32, #tpu.memory_space<vmem>>, vector<2x8xf32>,
    %c1_201 = arith.constant 1 : index
    %c0_202 = arith.constant 0 : index
    %c0_203 = arith.constant 0 : index
    %164 = vector.load %arg4[%c1_201, %c0_202, %c0_203] : memref<4x32x8xf32, #tpu.memory_space<vmem>>, vector<1x32x8xf32>
    %165 = vector.shape_cast %164 : vector<1x32x8xf32> to vector<32x8xf32>
    %cst_204 = arith.constant dense<0.000000e+00> : vector<2x8xf32>
    %166 = tpu.matmul %143, %165, %cst_204 {dimension_numbers = #tpu.dot_dimension_numbers<[1], [0], [0], [1], [0, 0, 1, 1], [], []>} : vector<2x32xf32>, vector<32x8xf32>, vector<2x8xf32> -> vector<2x8xf32>
    %c2_205 = arith.constant 2 : index
    %c0_206 = arith.constant 0 : index
    %167 = vector.load %arg11[%c2_205, %c0_206] : memref<8x8xf32, #tpu.memory_space<vmem>>, vector<2x8xf32>
    tpu.vector_store %arg11[%c2_205, %c0_206], %166 {strides = array<i32>} : memref<8x8xf32, #tpu.memory_space<vmem>>, vector<2x8xf32>,
    %c2_207 = arith.constant 2 : index
    %c0_208 = arith.constant 0 : index
    %c0_209 = arith.constant 0 : index
    %168 = vector.load %arg2[%c2_207, %c0_208, %c0_209] : memref<4x32x8xf32, #tpu.memory_space<vmem>>, vector<1x32x8xf32>
    %169 = vector.shape_cast %168 : vector<1x32x8xf32> to vector<32x8xf32>
    %cst_210 = arith.constant dense<0.000000e+00> : vector<2x8xf32>
    %170 = tpu.matmul %143, %169, %cst_210 {dimension_numbers = #tpu.dot_dimension_numbers<[1], [0], [0], [1], [0, 0, 1, 1], [], []>} : vector<2x32xf32>, vector<32x8xf32>, vector<2x8xf32> -> vector<2x8xf32>
    %c4_211 = arith.constant 4 : index
    %c0_212 = arith.constant 0 : index
    %171 = vector.load %arg9[%c4_211, %c0_212] : memref<8x8xf32, #tpu.memory_space<vmem>>, vector<2x8xf32>
    tpu.vector_store %arg9[%c4_211, %c0_212], %170 {strides = array<i32>} : memref<8x8xf32, #tpu.memory_space<vmem>>, vector<2x8xf32>,
    %c2_213 = arith.constant 2 : index
    %c0_214 = arith.constant 0 : index
    %c0_215 = arith.constant 0 : index
    %172 = vector.load %arg3[%c2_213, %c0_214, %c0_215] : memref<4x32x8xf32, #tpu.memory_space<vmem>>, vector<1x32x8xf32>
    %173 = vector.shape_cast %172 : vector<1x32x8xf32> to vector<32x8xf32>
    %cst_216 = arith.constant dense<0.000000e+00> : vector<2x8xf32>
    %174 = tpu.matmul %143, %173, %cst_216 {dimension_numbers = #tpu.dot_dimension_numbers<[1], [0], [0], [1], [0, 0, 1, 1], [], []>} : vector<2x32xf32>, vector<32x8xf32>, vector<2x8xf32> -> vector<2x8xf32>
    %c4_217 = arith.constant 4 : index
    %c0_218 = arith.constant 0 : index
    %175 = vector.load %arg10[%c4_217, %c0_218] : memref<8x8xf32, #tpu.memory_space<vmem>>, vector<2x8xf32>
    tpu.vector_store %arg10[%c4_217, %c0_218], %174 {strides = array<i32>} : memref<8x8xf32, #tpu.memory_space<vmem>>, vector<2x8xf32>,
    %c2_219 = arith.constant 2 : index
    %c0_220 = arith.constant 0 : index
    %c0_221 = arith.constant 0 : index
    %176 = vector.load %arg4[%c2_219, %c0_220, %c0_221] : memref<4x32x8xf32, #tpu.memory_space<vmem>>, vector<1x32x8xf32>
    %177 = vector.shape_cast %176 : vector<1x32x8xf32> to vector<32x8xf32>
    %cst_222 = arith.constant dense<0.000000e+00> : vector<2x8xf32>
    %178 = tpu.matmul %143, %177, %cst_222 {dimension_numbers = #tpu.dot_dimension_numbers<[1], [0], [0], [1], [0, 0, 1, 1], [], []>} : vector<2x32xf32>, vector<32x8xf32>, vector<2x8xf32> -> vector<2x8xf32>
    %c4_223 = arith.constant 4 : index
    %c0_224 = arith.constant 0 : index
    %179 = vector.load %arg11[%c4_223, %c0_224] : memref<8x8xf32, #tpu.memory_space<vmem>>, vector<2x8xf32>
    tpu.vector_store %arg11[%c4_223, %c0_224], %178 {strides = array<i32>} : memref<8x8xf32, #tpu.memory_space<vmem>>, vector<2x8xf32>,
    %c3_225 = arith.constant 3 : index
    %c0_226 = arith.constant 0 : index
    %c0_227 = arith.constant 0 : index
    %180 = vector.load %arg2[%c3_225, %c0_226, %c0_227] : memref<4x32x8xf32, #tpu.memory_space<vmem>>, vector<1x32x8xf32>
    %181 = vector.shape_cast %180 : vector<1x32x8xf32> to vector<32x8xf32>
    %cst_228 = arith.constant dense<0.000000e+00> : vector<2x8xf32>
    %182 = tpu.matmul %143, %181, %cst_228 {dimension_numbers = #tpu.dot_dimension_numbers<[1], [0], [0], [1], [0, 0, 1, 1], [], []>} : vector<2x32xf32>, vector<32x8xf32>, vector<2x8xf32> -> vector<2x8xf32>
    %c6_229 = arith.constant 6 : index
    %c0_230 = arith.constant 0 : index
    %183 = vector.load %arg9[%c6_229, %c0_230] : memref<8x8xf32, #tpu.memory_space<vmem>>, vector<2x8xf32>
    tpu.vector_store %arg9[%c6_229, %c0_230], %182 {strides = array<i32>} : memref<8x8xf32, #tpu.memory_space<vmem>>, vector<2x8xf32>,
    %c3_231 = arith.constant 3 : index
    %c0_232 = arith.constant 0 : index
    %c0_233 = arith.constant 0 : index
    %184 = vector.load %arg3[%c3_231, %c0_232, %c0_233] : memref<4x32x8xf32, #tpu.memory_space<vmem>>, vector<1x32x8xf32>
    %185 = vector.shape_cast %184 : vector<1x32x8xf32> to vector<32x8xf32>
    %cst_234 = arith.constant dense<0.000000e+00> : vector<2x8xf32>
    %186 = tpu.matmul %143, %185, %cst_234 {dimension_numbers = #tpu.dot_dimension_numbers<[1], [0], [0], [1], [0, 0, 1, 1], [], []>} : vector<2x32xf32>, vector<32x8xf32>, vector<2x8xf32> -> vector<2x8xf32>
    %c6_235 = arith.constant 6 : index
    %c0_236 = arith.constant 0 : index
    %187 = vector.load %arg10[%c6_235, %c0_236] : memref<8x8xf32, #tpu.memory_space<vmem>>, vector<2x8xf32>
    tpu.vector_store %arg10[%c6_235, %c0_236], %186 {strides = array<i32>} : memref<8x8xf32, #tpu.memory_space<vmem>>, vector<2x8xf32>,
    %c3_237 = arith.constant 3 : index
    %c0_238 = arith.constant 0 : index
    %c0_239 = arith.constant 0 : index
    %188 = vector.load %arg4[%c3_237, %c0_238, %c0_239] : memref<4x32x8xf32, #tpu.memory_space<vmem>>, vector<1x32x8xf32>
    %189 = vector.shape_cast %188 : vector<1x32x8xf32> to vector<32x8xf32>
    %cst_240 = arith.constant dense<0.000000e+00> : vector<2x8xf32>
    %190 = tpu.matmul %143, %189, %cst_240 {dimension_numbers = #tpu.dot_dimension_numbers<[1], [0], [0], [1], [0, 0, 1, 1], [], []>} : vector<2x32xf32>, vector<32x8xf32>, vector<2x8xf32> -> vector<2x8xf32>
    %c6_241 = arith.constant 6 : index
    %c0_242 = arith.constant 0 : index
    %191 = vector.load %arg11[%c6_241, %c0_242] : memref<8x8xf32, #tpu.memory_space<vmem>>, vector<2x8xf32>
    tpu.vector_store %arg11[%c6_241, %c0_242], %190 {strides = array<i32>} : memref<8x8xf32, #tpu.memory_space<vmem>>, vector<2x8xf32>,
    %c0_243 = arith.constant 0 : index
    %c0_244 = arith.constant 0 : index
    %192 = vector.load %arg9[%c0_243, %c0_244] : memref<8x8xf32, #tpu.memory_space<vmem>>, vector<8x8xf32>
    %c0_245 = arith.constant 0 : index
    %c0_246 = arith.constant 0 : index
    %193 = vector.load %arg10[%c0_245, %c0_246] : memref<8x8xf32, #tpu.memory_space<vmem>>, vector<8x8xf32>
    %c0_247 = arith.constant 0 : index
    %c0_248 = arith.constant 0 : index
    %194 = vector.load %arg11[%c0_247, %c0_248] : memref<8x8xf32, #tpu.memory_space<vmem>>, vector<8x8xf32>
    %cst_249 = arith.constant dense<0.000000e+00> : vector<8x8xf32>
    %195 = tpu.matmul %192, %193, %cst_249 {dimension_numbers = #tpu.dot_dimension_numbers<[1], [1], [0], [0], [0, 0, 1, 0], [], []>} : vector<8x8xf32>, vector<8x8xf32>, vector<8x8xf32> -> vector<8x8xf32>
    %cst_250 = arith.constant 0.353553385 : f32
    %196 = vector.broadcast %cst_250 : f32 to vector<8x8xf32>
    %197 = arith.mulf %195, %196 : vector<8x8xf32>
    %cst_251 = arith.constant dense<0xFF800000> : vector<8xf32>
    %198 = vector.multi_reduction <maximumf>, %197, %cst_251 [1] : vector<8x8xf32> to vector<8xf32>
    %199 = vector.shape_cast %198 : vector<8xf32> to vector<8x1xf32>
    %200 = vector.broadcast %199 : vector<8x1xf32> to vector<8x8xf32>
    %201 = arith.subf %197, %200 : vector<8x8xf32>
    %202 = math.exp %201 : vector<8x8xf32>
    %cst_252 = arith.constant dense<0.000000e+00> : vector<8xf32>
    %203 = vector.multi_reduction <add>, %202, %cst_252 [1] : vector<8x8xf32> to vector<8xf32>
    %204 = vector.shape_cast %203 : vector<8xf32> to vector<8x1xf32>
    %205 = tpu.reciprocal %204 {approx = true} : vector<8x1xf32> -> vector<8x1xf32>
    %206 = vector.broadcast %205 : vector<8x1xf32> to vector<8x8xf32>
    %207 = arith.mulf %202, %206 : vector<8x8xf32>
    %cst_253 = arith.constant dense<0.000000e+00> : vector<8x8xf32>
    %208 = tpu.matmul %207, %194, %cst_253 {dimension_numbers = #tpu.dot_dimension_numbers<[1], [0], [0], [1], [0, 0, 1, 1], [], []>} : vector<8x8xf32>, vector<8x8xf32>, vector<8x8xf32> -> vector<8x8xf32>
    %c2_254 = arith.constant 2 : index
    %c0_255 = arith.constant 0 : index
    %c0_256 = arith.constant 0 : index
    %209 = vector.load %arg5[%c2_254, %c0_255, %c0_256] : memref<4x8x32xf32, #tpu.memory_space<vmem>>, vector<1x8x32xf32>
    %210 = vector.shape_cast %209 : vector<1x8x32xf32> to vector<8x32xf32>
    %cst_257 = arith.constant dense<0.000000e+00> : vector<8x32xf32>
    %211 = tpu.matmul %208, %210, %cst_257 {dimension_numbers = #tpu.dot_dimension_numbers<[1], [0], [0], [1], [0, 0, 1, 1], [], []>} : vector<8x8xf32>, vector<8x32xf32>, vector<8x32xf32> -> vector<8x32xf32>
    %212 = arith.addf %142, %211 : vector<8x32xf32>
    %213 = vector.extract_strided_slice %1 {offsets = [6, 0], sizes = [2, 32], strides = [1, 1]} : vector<8x32xf32> to vector<2x32xf32>
    %c0_258 = arith.constant 0 : index
    %c0_259 = arith.constant 0 : index
    %c0_260 = arith.constant 0 : index
    %214 = vector.load %arg2[%c0_258, %c0_259, %c0_260] : memref<4x32x8xf32, #tpu.memory_space<vmem>>, vector<1x32x8xf32>
    %215 = vector.shape_cast %214 : vector<1x32x8xf32> to vector<32x8xf32>
    %cst_261 = arith.constant dense<0.000000e+00> : vector<2x8xf32>
    %216 = tpu.matmul %213, %215, %cst_261 {dimension_numbers = #tpu.dot_dimension_numbers<[1], [0], [0], [1], [0, 0, 1, 1], [], []>} : vector<2x32xf32>, vector<32x8xf32>, vector<2x8xf32> -> vector<2x8xf32>
    %c0_262 = arith.constant 0 : index
    %c0_263 = arith.constant 0 : index
    %217 = vector.load %arg9[%c0_262, %c0_263] : memref<8x8xf32, #tpu.memory_space<vmem>>, vector<2x8xf32>
    tpu.vector_store %arg9[%c0_262, %c0_263], %216 {strides = array<i32>} : memref<8x8xf32, #tpu.memory_space<vmem>>, vector<2x8xf32>,
    %c0_264 = arith.constant 0 : index
    %c0_265 = arith.constant 0 : index
    %c0_266 = arith.constant 0 : index
    %218 = vector.load %arg3[%c0_264, %c0_265, %c0_266] : memref<4x32x8xf32, #tpu.memory_space<vmem>>, vector<1x32x8xf32>
    %219 = vector.shape_cast %218 : vector<1x32x8xf32> to vector<32x8xf32>
    %cst_267 = arith.constant dense<0.000000e+00> : vector<2x8xf32>
    %220 = tpu.matmul %213, %219, %cst_267 {dimension_numbers = #tpu.dot_dimension_numbers<[1], [0], [0], [1], [0, 0, 1, 1], [], []>} : vector<2x32xf32>, vector<32x8xf32>, vector<2x8xf32> -> vector<2x8xf32>
    %c0_268 = arith.constant 0 : index
    %c0_269 = arith.constant 0 : index
    %221 = vector.load %arg10[%c0_268, %c0_269] : memref<8x8xf32, #tpu.memory_space<vmem>>, vector<2x8xf32>
    tpu.vector_store %arg10[%c0_268, %c0_269], %220 {strides = array<i32>} : memref<8x8xf32, #tpu.memory_space<vmem>>, vector<2x8xf32>,
    %c0_270 = arith.constant 0 : index
    %c0_271 = arith.constant 0 : index
    %c0_272 = arith.constant 0 : index
    %222 = vector.load %arg4[%c0_270, %c0_271, %c0_272] : memref<4x32x8xf32, #tpu.memory_space<vmem>>, vector<1x32x8xf32>
    %223 = vector.shape_cast %222 : vector<1x32x8xf32> to vector<32x8xf32>
    %cst_273 = arith.constant dense<0.000000e+00> : vector<2x8xf32>
    %224 = tpu.matmul %213, %223, %cst_273 {dimension_numbers = #tpu.dot_dimension_numbers<[1], [0], [0], [1], [0, 0, 1, 1], [], []>} : vector<2x32xf32>, vector<32x8xf32>, vector<2x8xf32> -> vector<2x8xf32>
    %c0_274 = arith.constant 0 : index
    %c0_275 = arith.constant 0 : index
    %225 = vector.load %arg11[%c0_274, %c0_275] : memref<8x8xf32, #tpu.memory_space<vmem>>, vector<2x8xf32>
    tpu.vector_store %arg11[%c0_274, %c0_275], %224 {strides = array<i32>} : memref<8x8xf32, #tpu.memory_space<vmem>>, vector<2x8xf32>,
    %c1_276 = arith.constant 1 : index
    %c0_277 = arith.constant 0 : index
    %c0_278 = arith.constant 0 : index
    %226 = vector.load %arg2[%c1_276, %c0_277, %c0_278] : memref<4x32x8xf32, #tpu.memory_space<vmem>>, vector<1x32x8xf32>
    %227 = vector.shape_cast %226 : vector<1x32x8xf32> to vector<32x8xf32>
    %cst_279 = arith.constant dense<0.000000e+00> : vector<2x8xf32>
    %228 = tpu.matmul %213, %227, %cst_279 {dimension_numbers = #tpu.dot_dimension_numbers<[1], [0], [0], [1], [0, 0, 1, 1], [], []>} : vector<2x32xf32>, vector<32x8xf32>, vector<2x8xf32> -> vector<2x8xf32>
    %c2_280 = arith.constant 2 : index
    %c0_281 = arith.constant 0 : index
    %229 = vector.load %arg9[%c2_280, %c0_281] : memref<8x8xf32, #tpu.memory_space<vmem>>, vector<2x8xf32>
    tpu.vector_store %arg9[%c2_280, %c0_281], %228 {strides = array<i32>} : memref<8x8xf32, #tpu.memory_space<vmem>>, vector<2x8xf32>,
    %c1_282 = arith.constant 1 : index
    %c0_283 = arith.constant 0 : index
    %c0_284 = arith.constant 0 : index
    %230 = vector.load %arg3[%c1_282, %c0_283, %c0_284] : memref<4x32x8xf32, #tpu.memory_space<vmem>>, vector<1x32x8xf32>
    %231 = vector.shape_cast %230 : vector<1x32x8xf32> to vector<32x8xf32>
    %cst_285 = arith.constant dense<0.000000e+00> : vector<2x8xf32>
    %232 = tpu.matmul %213, %231, %cst_285 {dimension_numbers = #tpu.dot_dimension_numbers<[1], [0], [0], [1], [0, 0, 1, 1], [], []>} : vector<2x32xf32>, vector<32x8xf32>, vector<2x8xf32> -> vector<2x8xf32>
    %c2_286 = arith.constant 2 : index
    %c0_287 = arith.constant 0 : index
    %233 = vector.load %arg10[%c2_286, %c0_287] : memref<8x8xf32, #tpu.memory_space<vmem>>, vector<2x8xf32>
    tpu.vector_store %arg10[%c2_286, %c0_287], %232 {strides = array<i32>} : memref<8x8xf32, #tpu.memory_space<vmem>>, vector<2x8xf32>,
    %c1_288 = arith.constant 1 : index
    %c0_289 = arith.constant 0 : index
    %c0_290 = arith.constant 0 : index
    %234 = vector.load %arg4[%c1_288, %c0_289, %c0_290] : memref<4x32x8xf32, #tpu.memory_space<vmem>>, vector<1x32x8xf32>
    %235 = vector.shape_cast %234 : vector<1x32x8xf32> to vector<32x8xf32>
    %cst_291 = arith.constant dense<0.000000e+00> : vector<2x8xf32>
    %236 = tpu.matmul %213, %235, %cst_291 {dimension_numbers = #tpu.dot_dimension_numbers<[1], [0], [0], [1], [0, 0, 1, 1], [], []>} : vector<2x32xf32>, vector<32x8xf32>, vector<2x8xf32> -> vector<2x8xf32>
    %c2_292 = arith.constant 2 : index
    %c0_293 = arith.constant 0 : index
    %237 = vector.load %arg11[%c2_292, %c0_293] : memref<8x8xf32, #tpu.memory_space<vmem>>, vector<2x8xf32>
    tpu.vector_store %arg11[%c2_292, %c0_293], %236 {strides = array<i32>} : memref<8x8xf32, #tpu.memory_space<vmem>>, vector<2x8xf32>,
    %c2_294 = arith.constant 2 : index
    %c0_295 = arith.constant 0 : index
    %c0_296 = arith.constant 0 : index
    %238 = vector.load %arg2[%c2_294, %c0_295, %c0_296] : memref<4x32x8xf32, #tpu.memory_space<vmem>>, vector<1x32x8xf32>
    %239 = vector.shape_cast %238 : vector<1x32x8xf32> to vector<32x8xf32>
    %cst_297 = arith.constant dense<0.000000e+00> : vector<2x8xf32>
    %240 = tpu.matmul %213, %239, %cst_297 {dimension_numbers = #tpu.dot_dimension_numbers<[1], [0], [0], [1], [0, 0, 1, 1], [], []>} : vector<2x32xf32>, vector<32x8xf32>, vector<2x8xf32> -> vector<2x8xf32>
    %c4_298 = arith.constant 4 : index
    %c0_299 = arith.constant 0 : index
    %241 = vector.load %arg9[%c4_298, %c0_299] : memref<8x8xf32, #tpu.memory_space<vmem>>, vector<2x8xf32>
    tpu.vector_store %arg9[%c4_298, %c0_299], %240 {strides = array<i32>} : memref<8x8xf32, #tpu.memory_space<vmem>>, vector<2x8xf32>,
    %c2_300 = arith.constant 2 : index
    %c0_301 = arith.constant 0 : index
    %c0_302 = arith.constant 0 : index
    %242 = vector.load %arg3[%c2_300, %c0_301, %c0_302] : memref<4x32x8xf32, #tpu.memory_space<vmem>>, vector<1x32x8xf32>
    %243 = vector.shape_cast %242 : vector<1x32x8xf32> to vector<32x8xf32>
    %cst_303 = arith.constant dense<0.000000e+00> : vector<2x8xf32>
    %244 = tpu.matmul %213, %243, %cst_303 {dimension_numbers = #tpu.dot_dimension_numbers<[1], [0], [0], [1], [0, 0, 1, 1], [], []>} : vector<2x32xf32>, vector<32x8xf32>, vector<2x8xf32> -> vector<2x8xf32>
    %c4_304 = arith.constant 4 : index
    %c0_305 = arith.constant 0 : index
    %245 = vector.load %arg10[%c4_304, %c0_305] : memref<8x8xf32, #tpu.memory_space<vmem>>, vector<2x8xf32>
    tpu.vector_store %arg10[%c4_304, %c0_305], %244 {strides = array<i32>} : memref<8x8xf32, #tpu.memory_space<vmem>>, vector<2x8xf32>,
    %c2_306 = arith.constant 2 : index
    %c0_307 = arith.constant 0 : index
    %c0_308 = arith.constant 0 : index
    %246 = vector.load %arg4[%c2_306, %c0_307, %c0_308] : memref<4x32x8xf32, #tpu.memory_space<vmem>>, vector<1x32x8xf32>
    %247 = vector.shape_cast %246 : vector<1x32x8xf32> to vector<32x8xf32>
    %cst_309 = arith.constant dense<0.000000e+00> : vector<2x8xf32>
    %248 = tpu.matmul %213, %247, %cst_309 {dimension_numbers = #tpu.dot_dimension_numbers<[1], [0], [0], [1], [0, 0, 1, 1], [], []>} : vector<2x32xf32>, vector<32x8xf32>, vector<2x8xf32> -> vector<2x8xf32>
    %c4_310 = arith.constant 4 : index
    %c0_311 = arith.constant 0 : index
    %249 = vector.load %arg11[%c4_310, %c0_311] : memref<8x8xf32, #tpu.memory_space<vmem>>, vector<2x8xf32>
    tpu.vector_store %arg11[%c4_310, %c0_311], %248 {strides = array<i32>} : memref<8x8xf32, #tpu.memory_space<vmem>>, vector<2x8xf32>,
    %c3_312 = arith.constant 3 : index
    %c0_313 = arith.constant 0 : index
    %c0_314 = arith.constant 0 : index
    %250 = vector.load %arg2[%c3_312, %c0_313, %c0_314] : memref<4x32x8xf32, #tpu.memory_space<vmem>>, vector<1x32x8xf32>
    %251 = vector.shape_cast %250 : vector<1x32x8xf32> to vector<32x8xf32>
    %cst_315 = arith.constant dense<0.000000e+00> : vector<2x8xf32>
    %252 = tpu.matmul %213, %251, %cst_315 {dimension_numbers = #tpu.dot_dimension_numbers<[1], [0], [0], [1], [0, 0, 1, 1], [], []>} : vector<2x32xf32>, vector<32x8xf32>, vector<2x8xf32> -> vector<2x8xf32>
    %c6_316 = arith.constant 6 : index
    %c0_317 = arith.constant 0 : index
    %253 = vector.load %arg9[%c6_316, %c0_317] : memref<8x8xf32, #tpu.memory_space<vmem>>, vector<2x8xf32>
    tpu.vector_store %arg9[%c6_316, %c0_317], %252 {strides = array<i32>} : memref<8x8xf32, #tpu.memory_space<vmem>>, vector<2x8xf32>,
    %c3_318 = arith.constant 3 : index
    %c0_319 = arith.constant 0 : index
    %c0_320 = arith.constant 0 : index
    %254 = vector.load %arg3[%c3_318, %c0_319, %c0_320] : memref<4x32x8xf32, #tpu.memory_space<vmem>>, vector<1x32x8xf32>
    %255 = vector.shape_cast %254 : vector<1x32x8xf32> to vector<32x8xf32>
    %cst_321 = arith.constant dense<0.000000e+00> : vector<2x8xf32>
    %256 = tpu.matmul %213, %255, %cst_321 {dimension_numbers = #tpu.dot_dimension_numbers<[1], [0], [0], [1], [0, 0, 1, 1], [], []>} : vector<2x32xf32>, vector<32x8xf32>, vector<2x8xf32> -> vector<2x8xf32>
    %c6_322 = arith.constant 6 : index
    %c0_323 = arith.constant 0 : index
    %257 = vector.load %arg10[%c6_322, %c0_323] : memref<8x8xf32, #tpu.memory_space<vmem>>, vector<2x8xf32>
    tpu.vector_store %arg10[%c6_322, %c0_323], %256 {strides = array<i32>} : memref<8x8xf32, #tpu.memory_space<vmem>>, vector<2x8xf32>,
    %c3_324 = arith.constant 3 : index
    %c0_325 = arith.constant 0 : index
    %c0_326 = arith.constant 0 : index
    %258 = vector.load %arg4[%c3_324, %c0_325, %c0_326] : memref<4x32x8xf32, #tpu.memory_space<vmem>>, vector<1x32x8xf32>
    %259 = vector.shape_cast %258 : vector<1x32x8xf32> to vector<32x8xf32>
    %cst_327 = arith.constant dense<0.000000e+00> : vector<2x8xf32>
    %260 = tpu.matmul %213, %259, %cst_327 {dimension_numbers = #tpu.dot_dimension_numbers<[1], [0], [0], [1], [0, 0, 1, 1], [], []>} : vector<2x32xf32>, vector<32x8xf32>, vector<2x8xf32> -> vector<2x8xf32>
    %c6_328 = arith.constant 6 : index
    %c0_329 = arith.constant 0 : index
    %261 = vector.load %arg11[%c6_328, %c0_329] : memref<8x8xf32, #tpu.memory_space<vmem>>, vector<2x8xf32>
    tpu.vector_store %arg11[%c6_328, %c0_329], %260 {strides = array<i32>} : memref<8x8xf32, #tpu.memory_space<vmem>>, vector<2x8xf32>,
    %c0_330 = arith.constant 0 : index
    %c0_331 = arith.constant 0 : index
    %262 = vector.load %arg9[%c0_330, %c0_331] : memref<8x8xf32, #tpu.memory_space<vmem>>, vector<8x8xf32>
    %c0_332 = arith.constant 0 : index
    %c0_333 = arith.constant 0 : index
    %263 = vector.load %arg10[%c0_332, %c0_333] : memref<8x8xf32, #tpu.memory_space<vmem>>, vector<8x8xf32>
    %c0_334 = arith.constant 0 : index
    %c0_335 = arith.constant 0 : index
    %264 = vector.load %arg11[%c0_334, %c0_335] : memref<8x8xf32, #tpu.memory_space<vmem>>, vector<8x8xf32>
    %cst_336 = arith.constant dense<0.000000e+00> : vector<8x8xf32>
    %265 = tpu.matmul %262, %263, %cst_336 {dimension_numbers = #tpu.dot_dimension_numbers<[1], [1], [0], [0], [0, 0, 1, 0], [], []>} : vector<8x8xf32>, vector<8x8xf32>, vector<8x8xf32> -> vector<8x8xf32>
    %cst_337 = arith.constant 0.353553385 : f32
    %266 = vector.broadcast %cst_337 : f32 to vector<8x8xf32>
    %267 = arith.mulf %265, %266 : vector<8x8xf32>
    %cst_338 = arith.constant dense<0xFF800000> : vector<8xf32>
    %268 = vector.multi_reduction <maximumf>, %267, %cst_338 [1] : vector<8x8xf32> to vector<8xf32>
    %269 = vector.shape_cast %268 : vector<8xf32> to vector<8x1xf32>
    %270 = vector.broadcast %269 : vector<8x1xf32> to vector<8x8xf32>
    %271 = arith.subf %267, %270 : vector<8x8xf32>
    %272 = math.exp %271 : vector<8x8xf32>
    %cst_339 = arith.constant dense<0.000000e+00> : vector<8xf32>
    %273 = vector.multi_reduction <add>, %272, %cst_339 [1] : vector<8x8xf32> to vector<8xf32>
    %274 = vector.shape_cast %273 : vector<8xf32> to vector<8x1xf32>
    %275 = tpu.reciprocal %274 {approx = true} : vector<8x1xf32> -> vector<8x1xf32>
    %276 = vector.broadcast %275 : vector<8x1xf32> to vector<8x8xf32>
    %277 = arith.mulf %272, %276 : vector<8x8xf32>
    %cst_340 = arith.constant dense<0.000000e+00> : vector<8x8xf32>
    %278 = tpu.matmul %277, %264, %cst_340 {dimension_numbers = #tpu.dot_dimension_numbers<[1], [0], [0], [1], [0, 0, 1, 1], [], []>} : vector<8x8xf32>, vector<8x8xf32>, vector<8x8xf32> -> vector<8x8xf32>
    %c3_341 = arith.constant 3 : index
    %c0_342 = arith.constant 0 : index
    %c0_343 = arith.constant 0 : index
    %279 = vector.load %arg5[%c3_341, %c0_342, %c0_343] : memref<4x8x32xf32, #tpu.memory_space<vmem>>, vector<1x8x32xf32>
    %280 = vector.shape_cast %279 : vector<1x8x32xf32> to vector<8x32xf32>
    %cst_344 = arith.constant dense<0.000000e+00> : vector<8x32xf32>
    %281 = tpu.matmul %278, %280, %cst_344 {dimension_numbers = #tpu.dot_dimension_numbers<[1], [0], [0], [1], [0, 0, 1, 1], [], []>} : vector<8x8xf32>, vector<8x32xf32>, vector<8x32xf32> -> vector<8x32xf32>
    %282 = arith.addf %212, %281 : vector<8x32xf32>
    %c0_345 = arith.constant 0 : index
    %c0_346 = arith.constant 0 : index
    %283 = vector.load %arg7[%c0_345, %c0_346] : memref<8x8xf32, #tpu.memory_space<vmem>>, vector<8x8xf32>
    %cst_347 = arith.constant dense<0.000000e+00> : vector<8x32xf32>
    %284 = tpu.matmul %283, %282, %cst_347 {dimension_numbers = #tpu.dot_dimension_numbers<[1], [0], [0], [1], [0, 0, 1, 1], [], []>} : vector<8x8xf32>, vector<8x32xf32>, vector<8x32xf32> -> vector<8x32xf32>
    %c0_348 = arith.constant 0 : index
    %c0_349 = arith.constant 0 : index
    %285 = vector.load %arg6[%c0_348, %c0_349] : memref<1x32xf32, #tpu.memory_space<vmem>>, vector<1x32xf32>
    %286 = vector.broadcast %285 : vector<1x32xf32> to vector<8x32xf32>
    %287 = arith.addf %284, %286 : vector<8x32xf32>
    %c0_350 = arith.constant 0 : index
    %c0_351 = arith.constant 0 : index
    %c0_352 = arith.constant 0 : index
    %288 = vector.load %arg8[%c0_350, %c0_351, %c0_352] : memref<1x8x32xf32, #tpu.memory_space<vmem>>, vector<1x8x32xf32>
    %289 = vector.shape_cast %288 : vector<1x8x32xf32> to vector<8x32xf32>
    %290 = vector.shape_cast %287 : vector<8x32xf32> to vector<1x8x32xf32>
    tpu.vector_store %arg8[%c0_350, %c0_351, %c0_352], %290 {strides = array<i32>} : memref<1x8x32xf32, #tpu.memory_space<vmem>>, vector<1x8x32xf32>,
    return
  }
  func.func @transform_0(%arg0: i32) -> (i32, i32, i32) {
    %c0_i32 = arith.constant 0 : i32
    %c0_i32_0 = arith.constant 0 : i32
    %c0_i32_1 = arith.constant 0 : i32
    return %arg0, %c0_i32, %c0_i32_0 : i32, i32, i32
  }
  func.func @transform_1(%arg0: i32) -> (i32, i32, i32) {
    %c0_i32 = arith.constant 0 : i32
    %c0_i32_0 = arith.constant 0 : i32
    %c0_i32_1 = arith.constant 0 : i32
    %c0_i32_2 = arith.constant 0 : i32
    return %c0_i32, %c0_i32_0, %c0_i32_1 : i32, i32, i32
  }
  func.func @transform_2(%arg0: i32) -> (i32, i32, i32) {
    %c0_i32 = arith.constant 0 : i32
    %c0_i32_0 = arith.constant 0 : i32
    %c0_i32_1 = arith.constant 0 : i32
    %c0_i32_2 = arith.constant 0 : i32
    return %c0_i32, %c0_i32_0, %c0_i32_1 : i32, i32, i32
  }
  func.func @transform_3(%arg0: i32) -> (i32, i32, i32) {
    %c0_i32 = arith.constant 0 : i32
    %c0_i32_0 = arith.constant 0 : i32
    %c0_i32_1 = arith.constant 0 : i32
    %c0_i32_2 = arith.constant 0 : i32
    return %c0_i32, %c0_i32_0, %c0_i32_1 : i32, i32, i32
  }
  func.func @transform_4(%arg0: i32) -> (i32, i32, i32) {
    %c0_i32 = arith.constant 0 : i32
    %c0_i32_0 = arith.constant 0 : i32
    %c0_i32_1 = arith.constant 0 : i32
    %c0_i32_2 = arith.constant 0 : i32
    return %c0_i32, %c0_i32_0, %c0_i32_1 : i32, i32, i32
  }
  func.func @transform_5(%arg0: i32) -> (i32, i32) {
    %c0_i32 = arith.constant 0 : i32
    %c0_i32_0 = arith.constant 0 : i32
    %c0_i32_1 = arith.constant 0 : i32
    return %c0_i32, %c0_i32_0 : i32, i32
  }
  func.func @transform_6(%arg0: i32) -> (i32, i32) {
    %c0_i32 = arith.constant 0 : i32
    %c0_i32_0 = arith.constant 0 : i32
    %c0_i32_1 = arith.constant 0 : i32
    return %c0_i32, %c0_i32_0 : i32, i32
  }
  func.func @transform_7(%arg0: i32) -> (i32, i32, i32) {
    %c0_i32 = arith.constant 0 : i32
    %c0_i32_0 = arith.constant 0 : i32
    %c0_i32_1 = arith.constant 0 : i32
    return %arg0, %c0_i32, %c0_i32_0 : i32, i32, i32
  }
}

</mosaic_0001>

<bundles_post_ra>
// kernel: multi_head_self_attention.1
= control target key start
LH: loop header
LB: loop body
LE: loop exit
PB: predicated region body
PF: predicated region fallthrough
CT: control target
= control target key end

     0   :  { %12 = vsyncpa [#allocation6], 0  ;;  %s7412_s0 = inlined_call_operand.vmem [shape: f32[2,8,32], index: 0, kind: input, shape index: {}]   ;;  %s7413_s1 = inlined_call_operand.vmem [shape: f32[4,32,8], index: 1, kind: input, shape index: {}]   ;;  %s7414_s2 = inlined_call_operand.vmem [shape: f32[4,32,8], index: 2, kind: input, shape index: {}]   ;;  %s7415_s3 = inlined_call_operand.vmem [shape: f32[4,32,8], index: 3, kind: input, shape index: {}]   ;;  %s7416_s4 = inlined_call_operand.vmem [shape: f32[4,8,32], index: 4, kind: input, shape index: {}]   ;;  %s7417_s5 = inlined_call_operand.vmem [shape: f32[1,32], index: 5, kind: input, shape index: {}]   ;;  %s7418_s6 = inlined_call_operand.vmem [shape: f32[8,8], index: 6, kind: input, shape index: {}]   ;;  %s7419_s7 = inlined_call_operand.hbm [shape: f32[2,8,32], index: 7, kind: output, shape index: {}]  }
   0x1   :  { %14 = vsyncpa [#allocation6 + $0x1], 0  ;;  %s6256_s24 = smov 0   ;;  %s6258_s25 = smov 0  }
   0x2   :  { %s6260_s26 = smov 0   ;;  %s6262_s27 = smov 0  }
   0x3 LB: > { %s6277_s28 = sadd.s32 4294967295, %s6211_s27   ;;  %s5011_s29 = sadd.s32 4294967294, %s6211_s27   ;;  %s6211_s27 = sphi %s6262_s27, %s7425_s27   ;;  %s6207_s26 = sphi %s6260_s26, %s7424_s26   ;;  %s6203_s25 = sphi %s6258_s25, %s7423_s25   ;;  %s6199_s24 = sphi %s6256_s24, %s7422_s24  }
   0x4   : > { %s6281_s30 = sadd.s32 1, %s6211_s27   ;;  %s179_s8 = sadd.s32 1, %s6207_s26 }
   0x5   : > { %s176_s9 = ssub.s32 %s6211_s27, %s6281_s30  ;;  %p189_p0 = scmp.ne.s32.totalorder %s6207_s26, %s6203_s25 }
   0x6   : > { %p177_p1 = scmp.eq.s32.totalorder %s176_s9, 0  ;;  %p190_p2 = scmp.eq.s32.totalorder %s6277_s28, 1 }
   0x7   : > { %p195_p3 = scmp.ne.s32.totalorder %s6203_s25, %s6199_s24  ;;  %p196_p4 = scmp.eq.s32.totalorder %s5011_s29, 1 }
   0x8   : > { %s6292_s10 = scalar_select %p177_p1, %s6207_s26, %s179_s8  }
   0x9   : > { %p6294_p5 = por %p190_p2, %p189_p0  ;;  %p6298_p6 = por %p196_p4, %p195_p3 }
   0xa   : > { %p5014_p7 = scmp.ge.s32.totalorder %s6211_s27, 1  ;;  %p239_p8 = scmp.lt.s32.totalorder %s6211_s27, 3 }
   0xc   : > { %p240_p9 = pnand %p5014_p7, %p239_p8 }
   0xd   : > { %p270_p10 = scmp.lt.s32.totalorder (!%p240_p9), %s6277_s28, 1  ;;  %s267_s16 = sand.u32 (!%p240_p9), 1, %s6203_s25  }
   0xe   : > { %243 = sbr.rel (%p240_p9) target bundleno = 4028 (0xfbc), region = 48  ;;  %s5015_s18 = sshll.u32 (!%p240_p9), %s267_s16, 3 }
   0xf   : > { %s269_s22 = scalar_lea.vmem (!%p240_p9), [#allocation5], %s5015_s18 }
  0x10   : > { %s4952_s23 = sshll.u32 (!%p240_p9), %s269_s22, 4  ;;  %s4953_s23 = int_to_ptr.vmem [resolvable:$true] %s4952_s23 }
  0x11   : > { %s6151_s13 = scalar_lea.vmem (!%p240_p9), %s4953_s23, 128 }
  0x12   : > { %p6152_p11 = scmp.ne.s32.totalorder (!%p240_p9), %s4953_s23, %s6151_s13 }
  0x13   : > { %v6307_v0 = vld [vmem:[%s7413_s1 + $0x18] sm:$0xff]  ;;  %v6213_v2 = vmov 0.0   ;;  %v6320_v3 = vld [vmem:[%s7413_s1 + $0x10] sm:$0xff]  ;;  %s271_s21 = scalar_select %p270_p10, %s6277_s28, 1  ;;  %v6335_v5 = vld [vmem:[%s7413_s1 + $0x8] sm:$0xff]  ;;  %vm279_vm0 = vcmask 261120  }
  0x14   : > { %v6312_v1 = vld [vmem:[%s7414_s2 + $0x18] sm:$0xff]  ;;  %5500 = vmatprep.subr.mxu0 %v6213_v2  ;;  %5511 = vmatprep.subr.mxu1 %v6213_v2  ;;  %v6325_v4 = vld [vmem:[%s7414_s2 + $0x10] sm:$0xff]  ;;  %v6340_v6 = vld [vmem:[%s7414_s2 + $0x8] sm:$0xff]  ;;  %vm6214_vm1 = vmmov 0   ;;  %vm353_vm2 = vcmask 58368   ;;  %vm1192_vm3 = vcmask 64512   ;;  %p6153_p12 = pnand %p6152_p11, %p6294_p5 }
  0x15   : > { %5501 = vmatpush3.msra.mxu0 %v6307_v0  ;;  %5512 = vmatpush3.msra.mxu1 %v6312_v1  ;;  %s5016_s9 = sshll.u32 %s271_s21, 3  ;;  %v6349_v7 = vld [vmem:[%s7413_s1] sm:$0xff]  ;;  %v6377_v10 = vld [vmem:[%s7415_s3 + $0x18] sm:$0xff]  ;;  %v6393_v12 = vld [vmem:[%s7415_s3 + $0x10] sm:$0xff]  ;;  %s5231_s21 = sshll.u32 %s6277_s28, 7 }
  0x16   : > { %5502 = vmatprep.subr.mxu0 %v6213_v2  ;;  %5513 = vmatprep.subr.mxu1 %v6213_v2  ;;  %s6354_s17 = scalar_lea.vmem %s7412_s0, %s5016_s9  ;;  %v6361_v8 = vld [vmem:[%s7414_s2] sm:$0xff]  ;;  %v6382_v11 = vld [vmem:[%s7413_s1 + $0x38] sm:$0xff]  ;;  %v6398_v13 = vld [vmem:[%s7413_s1 + $0x30] sm:$0xff]  ;;  %s7376_s9 = scalar_lea.hbm %s7419_s7, %s5231_s21 }
  0x17   : > { %5503 = vmatpush3.msra.mxu0 %v6320_v3  ;;  %5514 = vmatpush3.msra.mxu1 %v6325_v4  ;;  %v6364_v9 = vld [vmem:[%s6354_s17] sm:$0xff]  ;;  %v6407_v14 = vld [vmem:[%s7415_s3 + $0x8] sm:$0xff]  ;;  %v6441_v18 = vld [vmem:[%s7414_s2 + $0x38] sm:$0xff]  ;;  %p6154_p13 = pneg %p6153_p12  ;;  %s6215_s28 = smov [#allocation5]  }
  0x18   : > { %5504 = vmatprep.subr.mxu0 %v6213_v2  ;;  %5515 = vmatprep.subr.mxu1 %v6213_v2  ;;  %v6412_v15 = vld [vmem:[%s7413_s1 + $0x28] sm:$0xff]  ;;  %v6421_v16 = vld [vmem:[%s7415_s3] sm:$0xff]  ;;  %v6446_v19 = vld [vmem:[%s7415_s3 + $0x38] sm:$0xff]  ;;  %s6155_s14 = sshll.u32 %s6215_s28, 4  ;;  %s6156_s14 = int_to_ptr.vmem [resolvable:$false] %s6155_s14 }
  0x19   : > { %5505 = vmatpush3.msra.mxu0 %v6335_v5  ;;  %5516 = vmatpush3.msra.mxu1 %v6340_v6  ;;  %v6428_v17 = vld [vmem:[%s7413_s1 + $0x20] sm:$0xff]  ;;  %v6457_v20 = vld [vmem:[%s7414_s2 + $0x30] sm:$0xff]  ;;  %v6471_v22 = vld [vmem:[%s7414_s2 + $0x28] sm:$0xff]  ;;  %s6157_s15 = scalar_lea.vmem %s6156_s14, 256  ;;  %p6158_p0 = scmp.lt.s32.totalorder %s4953_s23, %s6156_s14 }
  0x1a   : > { %5506 = vmatprep.subr.mxu0 %v6213_v2  ;;  %5517 = vmatprep.subr.mxu1 %v6213_v2  ;;  %v6462_v21 = vld [vmem:[%s7415_s3 + $0x30] sm:$0xff]  ;;  %v6476_v23 = vld [vmem:[%s7415_s3 + $0x28] sm:$0xff]  ;;  %v6485_v24 = vld [vmem:[%s7414_s2 + $0x20] sm:$0xff]  ;;  %p6159_p1 = scmp.lt.s32.totalorder %s6157_s15, %s6151_s13 }
  0x1b   : > { %5507 = vmatpush3.msra.mxu0 %v6349_v7  ;;  %5508 = vmatprep.mubr.msk.f32.mxu0 %vm6214_vm1, %v6213_v2  ;;  %v6492_v25 = vld [vmem:[%s7415_s3 + $0x20] sm:$0xff]  ;;  %v6505_v26 = vld [vmem:[%s7413_s1 + $0x58] sm:$0xff]  ;;  %v6521_v28 = vld [vmem:[%s7413_s1 + $0x50] sm:$0xff] }
  0x1c   : > { %5518 = vmatpush3.msra.mxu1 %v6361_v8  ;;  %5509 = vmatmul.mubr.msk.f32.vlgmr.msra.gmra.mxu0 %vm279_vm0, %v6364_v9  ;;  %v6510_v27 = vld [vmem:[%s7414_s2 + $0x58] sm:$0xff]  ;;  %v6526_v29 = vld [vmem:[%s7414_s2 + $0x50] sm:$0xff]  ;;  %v6535_v30 = vld [vmem:[%s7413_s1 + $0x48] sm:$0xff]  ;;  %p6160_p2 = por %p6159_p1, %p6158_p0 }
  0x1d   : > { %5519 = vmatprep.mubr.msk.f32.mxu1 %vm6214_vm1, %v6213_v2  ;;  %5522 = vmatprep.subr.mxu0 %v6213_v2  ;;  %v6540_v31 = vld [vmem:[%s7414_s2 + $0x48] sm:$0xff]  ;;  %v6549_v32 = vld [vmem:[%s7413_s1 + $0x40] sm:$0xff]  ;;  %v6569_v34 = vld [vmem:[%s7415_s3 + $0x58] sm:$0xff] }
  0x1e   : > { %5533 = vmatprep.subr.mxu1 %v6213_v2  ;;  %5520 = vmatmul.mubr.msk.f32.vlgmr.msra.gmra.mxu1 %vm279_vm0, %v6364_v9  ;;  %v6556_v33 = vld [vmem:[%s7414_s2 + $0x40] sm:$0xff]  ;;  %v6574_v35 = vld [vmem:[%s7413_s1 + $0x78] sm:$0xff]  ;;  %v6585_v36 = vld [vmem:[%s7415_s3 + $0x50] sm:$0xff]  ;;  %p6161_p3 = pnand %p6160_p2, %p6154_p13 }
  0x1f   : > { %5523 = vmatpush3.msra.mxu0 %v6377_v10  ;;  %5534 = vmatpush3.msra.mxu1 %v6382_v11  ;;  %v6590_v37 = vld [vmem:[%s7413_s1 + $0x70] sm:$0xff]  ;;  %v6599_v38 = vld [vmem:[%s7415_s3 + $0x48] sm:$0xff]  ;;  %v6613_v40 = vld [vmem:[%s7415_s3 + $0x40] sm:$0xff] }
  0x20   : > { %5524 = vmatprep.subr.mxu0 %v6213_v2  ;;  %5535 = vmatprep.subr.mxu1 %v6213_v2  ;;  %v6604_v39 = vld [vmem:[%s7413_s1 + $0x68] sm:$0xff]  ;;  %v6620_v41 = vld [vmem:[%s7413_s1 + $0x60] sm:$0xff]  ;;  %v6633_v42 = vld [vmem:[%s7414_s2 + $0x78] sm:$0xff] }
  0x21   : > { %5525 = vmatpush3.msra.mxu0 %v6393_v12  ;;  %5536 = vmatpush3.msra.mxu1 %v6398_v13  ;;  %v6638_v43 = vld [vmem:[%s7415_s3 + $0x78] sm:$0xff]  ;;  %v6649_v44 = vld [vmem:[%s7414_s2 + $0x70] sm:$0xff]  ;;  %v6663_v46 = vld [vmem:[%s7414_s2 + $0x68] sm:$0xff] }
  0x22   : > { %5526 = vmatprep.subr.mxu0 %v6213_v2  ;;  %5537 = vmatprep.subr.mxu1 %v6213_v2  ;;  %v6654_v45 = vld [vmem:[%s7415_s3 + $0x70] sm:$0xff]  ;;  %v6668_v47 = vld [vmem:[%s7415_s3 + $0x68] sm:$0xff]  ;;  %v6677_v48 = vld [vmem:[%s7414_s2 + $0x60] sm:$0xff] }
  0x23   : > { %5527 = vmatpush3.msra.mxu0 %v6407_v14  ;;  %5538 = vmatpush3.msra.mxu1 %v6412_v15  ;;  %v6684_v49 = vld [vmem:[%s7415_s3 + $0x60] sm:$0xff] }
  0x24   : > { %5528 = vmatprep.subr.mxu0 %v6213_v2  ;;  %5539 = vmatprep.subr.mxu1 %v6213_v2 }
  0x25   : > { %5529 = vmatpush3.msra.mxu0 %v6421_v16  ;;  %5530 = vmatprep.mubr.msk.f32.mxu0 %vm6214_vm1, %v6213_v2 }
  0x26   : > { %5540 = vmatpush3.msra.mxu1 %v6428_v17  ;;  %5531 = vmatmul.mubr.msk.f32.vlgmr.msra.gmra.mxu0 %vm279_vm0, %v6364_v9 }
  0x27   : > { %5541 = vmatprep.mubr.msk.f32.mxu1 %vm6214_vm1, %v6213_v2  ;;  %5544 = vmatprep.subr.mxu0 %v6213_v2 }
  0x28   : > { %5555 = vmatprep.subr.mxu1 %v6213_v2  ;;  %5542 = vmatmul.mubr.msk.f32.vlgmr.msra.gmra.mxu1 %vm279_vm0, %v6364_v9 }
  0x29   : > { %5545 = vmatpush3.msra.mxu0 %v6441_v18  ;;  %5556 = vmatpush3.msra.mxu1 %v6446_v19 }
  0x2a   : > { %5546 = vmatprep.subr.mxu0 %v6213_v2  ;;  %5557 = vmatprep.subr.mxu1 %v6213_v2 }
  0x2b   : > { %5547 = vmatpush3.msra.mxu0 %v6457_v20  ;;  %5558 = vmatpush3.msra.mxu1 %v6462_v21 }
  0x2c   : > { %5548 = vmatprep.subr.mxu0 %v6213_v2  ;;  %5559 = vmatprep.subr.mxu1 %v6213_v2 }
  0x2d   : > { %5549 = vmatpush3.msra.mxu0 %v6471_v22  ;;  %5560 = vmatpush3.msra.mxu1 %v6476_v23 }
  0x2e   : > { %5550 = vmatprep.subr.mxu0 %v6213_v2  ;;  %5561 = vmatprep.subr.mxu1 %v6213_v2 }
  0x2f   : > { %5551 = vmatpush3.msra.mxu0 %v6485_v24  ;;  %5552 = vmatprep.mubr.msk.f32.mxu0 %vm6214_vm1, %v6213_v2 }
  0x30   : > { %5562 = vmatpush3.msra.mxu1 %v6492_v25  ;;  %5553 = vmatmul.mubr.msk.f32.vlgmr.msra.gmra.mxu0 %vm279_vm0, %v6364_v9 }
  0x31   : > { %5563 = vmatprep.mubr.msk.f32.mxu1 %vm6214_vm1, %v6213_v2  ;;  %5566 = vmatprep.subr.mxu0 %v6213_v2 }
  0x32   : > { %5577 = vmatprep.subr.mxu1 %v6213_v2  ;;  %5564 = vmatmul.mubr.msk.f32.vlgmr.msra.gmra.mxu1 %vm279_vm0, %v6364_v9 }
  0x33   : > { %5567 = vmatpush3.msra.mxu0 %v6505_v26  ;;  %5578 = vmatpush3.msra.mxu1 %v6510_v27 }
  0x34   : > { %5568 = vmatprep.subr.mxu0 %v6213_v2  ;;  %5579 = vmatprep.subr.mxu1 %v6213_v2 }
  0x35   : > { %5569 = vmatpush3.msra.mxu0 %v6521_v28  ;;  %5580 = vmatpush3.msra.mxu1 %v6526_v29 }
  0x36   : > { %5570 = vmatprep.subr.mxu0 %v6213_v2  ;;  %5581 = vmatprep.subr.mxu1 %v6213_v2 }
  0x37   : > { %5571 = vmatpush3.msra.mxu0 %v6535_v30  ;;  %5582 = vmatpush3.msra.mxu1 %v6540_v31 }
  0x38   : > { %5572 = vmatprep.subr.mxu0 %v6213_v2  ;;  %5583 = vmatprep.subr.mxu1 %v6213_v2 }
  0x39   : > { %5573 = vmatpush3.msra.mxu0 %v6549_v32  ;;  %5574 = vmatprep.mubr.msk.f32.mxu0 %vm6214_vm1, %v6213_v2 }
  0x3a   : > { %5584 = vmatpush3.msra.mxu1 %v6556_v33  ;;  %5575 = vmatmul.mubr.msk.f32.vlgmr.msra.gmra.mxu0 %vm279_vm0, %v6364_v9 }
  0x3b   : > { %5585 = vmatprep.mubr.msk.f32.mxu1 %vm6214_vm1, %v6213_v2  ;;  %5588 = vmatprep.subr.mxu0 %v6213_v2 }
  0x3c   : > { %5599 = vmatprep.subr.mxu1 %v6213_v2  ;;  %5586 = vmatmul.mubr.msk.f32.vlgmr.msra.gmra.mxu1 %vm279_vm0, %v6364_v9 }
  0x3d   : > { %5589 = vmatpush3.msra.mxu0 %v6569_v34  ;;  %5600 = vmatpush3.msra.mxu1 %v6574_v35 }
  0x3e   : > { %5590 = vmatprep.subr.mxu0 %v6213_v2  ;;  %5601 = vmatprep.subr.mxu1 %v6213_v2 }
  0x3f   : > { %5591 = vmatpush3.msra.mxu0 %v6585_v36  ;;  %5602 = vmatpush3.msra.mxu1 %v6590_v37 }
  0x40   : > { %5592 = vmatprep.subr.mxu0 %v6213_v2  ;;  %5603 = vmatprep.subr.mxu1 %v6213_v2 }
  0x41   : > { %5593 = vmatpush3.msra.mxu0 %v6599_v38  ;;  %5604 = vmatpush3.msra.mxu1 %v6604_v39 }
  0x42   : > { %5594 = vmatprep.subr.mxu0 %v6213_v2  ;;  %5605 = vmatprep.subr.mxu1 %v6213_v2 }
  0x43   : > { %5595 = vmatpush3.msra.mxu0 %v6613_v40  ;;  %5596 = vmatprep.mubr.msk.f32.mxu0 %vm6214_vm1, %v6213_v2 }
  0x44   : > { %5606 = vmatpush3.msra.mxu1 %v6620_v41  ;;  %5607 = vmatprep.mubr.msk.f32.mxu1 %vm6214_vm1, %v6213_v2 }
  0x45   : > { %5597 = vmatmul.mubr.msk.f32.vlgmr.msra.gmra.mxu0 %vm279_vm0, %v6364_v9  ;;  %5608 = vmatmul.mubr.msk.f32.vlgmr.msra.gmra.mxu1 %vm279_vm0, %v6364_v9 }
  0x46   : > { %5610 = vmatprep.subr.mxu0 %v6213_v2  ;;  %5621 = vmatprep.subr.mxu1 %v6213_v2 }
  0x47   : > { %5611 = vmatpush3.msra.mxu0 %v6633_v42  ;;  %5622 = vmatpush3.msra.mxu1 %v6638_v43 }
  0x48   : > { %5612 = vmatprep.subr.mxu0 %v6213_v2  ;;  %5623 = vmatprep.subr.mxu1 %v6213_v2 }
  0x49   : > { %5613 = vmatpush3.msra.mxu0 %v6649_v44  ;;  %5624 = vmatpush3.msra.mxu1 %v6654_v45 }
  0x4a   : > { %5614 = vmatprep.subr.mxu0 %v6213_v2  ;;  %5625 = vmatprep.subr.mxu1 %v6213_v2 }
  0x4b   : > { %5615 = vmatpush3.msra.mxu0 %v6663_v46  ;;  %5626 = vmatpush3.msra.mxu1 %v6668_v47 }
  0x4c   : > { %5616 = vmatprep.subr.mxu0 %v6213_v2  ;;  %5627 = vmatprep.subr.mxu1 %v6213_v2 }
  0x4d   : > { %5617 = vmatpush3.msra.mxu0 %v6677_v48  ;;  %5618 = vmatprep.mubr.msk.f32.mxu0 %vm6214_vm1, %v6213_v2 }
  0x4e   : > { %5628 = vmatpush3.msra.mxu1 %v6684_v49  ;;  %5629 = vmatprep.mubr.msk.f32.mxu1 %vm6214_vm1, %v6213_v2 }
  0x4f   : > { %5619 = vmatmul.mubr.msk.f32.vlgmr.msra.gmra.mxu0 %vm279_vm0, %v6364_v9  ;;  %5630 = vmatmul.mubr.msk.f32.vlgmr.msra.gmra.mxu1 %vm279_vm0, %v6364_v9 }
  0x50   : > { %5632 = vmatprep.subr.mxu0 %v6213_v2  ;;  %5637 = vmatprep.subr.mxu1 %v6213_v2 }
  0x51   : > { %5634 = vmatprep.mubr.msk.f32.mxu0 %vm6214_vm1, %v6213_v2  ;;  %5639 = vmatprep.mubr.msk.f32.mxu1 %vm6214_vm1, %v6213_v2 }
  0xdc   : > { %v349_v50 = vpop.f32.mrf.mxu0 }
  0xdd   : > { %354 = vst.msk [vmem:[#allocation2] sm:$0x3] %vm353_vm2, %v349_v50 }
  0xde   : > { %v5510_v51 = vpop.f32.mrf.mxu0  ;;  %v425_v52 = vpop.f32.mrf.mxu1 }
  0xdf   : > { %429 = vst.msk [vmem:[#allocation3] sm:$0x3] %vm353_vm2, %v425_v52 }
  0xe0   : > { %v5521_v53 = vpop.f32.mrf.mxu1 }
  0xe6   : > { %v500_v54 = vpop.f32.mrf.mxu0 }
  0xe7   : > { %504 = vst.msk [vmem:[#allocation4] sm:$0x3] %vm353_vm2, %v500_v54 }
  0xe8   : > { %v5532_v55 = vpop.f32.mrf.mxu0  ;;  %v576_v56 = vpop.f32.mrf.mxu1 }
  0xe9   : > { %580 = vst.msk [vmem:[#allocation2 + $0x2] sm:$0x3] %vm353_vm2, %v576_v56 }
  0xea   : > { %v5543_v57 = vpop.f32.mrf.mxu1 }
  0xf0   : > { %v652_v58 = vpop.f32.mrf.mxu0 }
  0xf1   : > { %656 = vst.msk [vmem:[#allocation3 + $0x2] sm:$0x3] %vm353_vm2, %v652_v58 }
  0xf2   : > { %v5554_v59 = vpop.f32.mrf.mxu0  ;;  %v728_v60 = vpop.f32.mrf.mxu1 }
  0xf3   : > { %732 = vst.msk [vmem:[#allocation4 + $0x2] sm:$0x3] %vm353_vm2, %v728_v60 }
  0xf4   : > { %v5565_v61 = vpop.f32.mrf.mxu1 }
  0xfa   : > { %v804_v62 = vpop.f32.mrf.mxu0 }
  0xfb   : > { %808 = vst.msk [vmem:[#allocation2 + $0x4] sm:$0x3] %vm353_vm2, %v804_v62 }
  0xfc   : > { %v5576_v63 = vpop.f32.mrf.mxu0  ;;  %v880_v50 = vpop.f32.mrf.mxu1 }
  0xfd   : > { %884 = vst.msk [vmem:[#allocation3 + $0x4] sm:$0x3] %vm353_vm2, %v880_v50 }
  0xfe   : > { %v5587_v51 = vpop.f32.mrf.mxu1 }
 0x105   : > { %v956_v52 = vpop.f32.mrf.mxu0  ;;  %v1032_v53 = vpop.f32.mrf.mxu1 }
 0x106   : > { %960 = vst.msk [vmem:[#allocation4 + $0x4] sm:$0x3] %vm353_vm2, %v956_v52  ;;  %1036 = vst.msk [vmem:[#allocation2 + $0x6] sm:$0x3] %vm353_vm2, %v1032_v53 }
 0x107   : > { %v5598_v54 = vpop.f32.mrf.mxu0  ;;  %v5609_v55 = vpop.f32.mrf.mxu1 }
 0x10d   : > { %v1189_v62 = vld [vmem:[#allocation2] sm:$0xff] }
 0x10f   : > { %v1108_v56 = vpop.f32.mrf.mxu0  ;;  %v1184_v57 = vpop.f32.mrf.mxu1 }
 0x110   : > { %1112 = vst.msk [vmem:[#allocation3 + $0x6] sm:$0x3] %vm353_vm2, %v1108_v56  ;;  %1188 = vst.msk [vmem:[#allocation4 + $0x6] sm:$0x3] %vm353_vm2, %v1184_v57 }
 0x111   : > { %v5620_v58 = vpop.f32.mrf.mxu0  ;;  %v5631_v59 = vpop.f32.mrf.mxu1 }
 0x112   : > { %v6733_v58 = vrot.slane %v6364_v9, 2 }
 0x117   : > { %v1190_v60 = vld [vmem:[#allocation3] sm:$0xff]  ;;  %v1191_v61 = vld [vmem:[#allocation4] sm:$0xff] }
 0x118   : > { %5633 = vmatpush3.xpose.msk.msra.mxu0 %vm1192_vm3, %v1190_v60  ;;  %5638 = vmatpush3.msra.mxu1 %v1191_v61 }
 0x119   : > { %5642 = vmatprep.subr.mxu0 %v6213_v2  ;;  %5653 = vmatprep.subr.mxu1 %v6213_v2 }
 0x11b   : > { %5635 = vmatmul.mubr.msk.f32.vlgmr.msra.gmra.mxu0 %vm1192_vm3, %v1189_v62 }
 0x11c   : > { %5643 = vmatpush3.msra.mxu0 %v6307_v0  ;;  %5650 = vmatprep.mubr.msk.f32.mxu0 %vm6214_vm1, %v6213_v2 }
 0x11d   : > { %5644 = vmatprep.subr.mxu0 %v6213_v2 }
 0x11e   : > { %5645 = vmatpush3.msra.mxu0 %v6320_v3 }
 0x11f   : > { %5646 = vmatprep.subr.mxu0 %v6213_v2 }
 0x120   : > { %5647 = vmatpush3.msra.mxu0 %v6335_v5 }
 0x121   : > { %5648 = vmatprep.subr.mxu0 %v6213_v2 }
 0x122   : > { %5649 = vmatpush3.msra.mxu0 %v6349_v7 }
 0x123   : > { %5664 = vmatprep.subr.mxu0 %v6213_v2  ;;  %5651 = vmatmul.mubr.msk.f32.vlgmr.msra.gmra.mxu0 %vm279_vm0, %v6733_v58 }
 0x124   : > { %5665 = vmatpush3.msra.mxu0 %v6377_v10  ;;  %5672 = vmatprep.mubr.msk.f32.mxu0 %vm6214_vm1, %v6213_v2 }
 0x125   : > { %5666 = vmatprep.subr.mxu0 %v6213_v2 }
 0x126   : > { %5667 = vmatpush3.msra.mxu0 %v6393_v12 }
 0x127   : > { %5668 = vmatprep.subr.mxu0 %v6213_v2 }
 0x128   : > { %5669 = vmatpush3.msra.mxu0 %v6407_v14 }
 0x129   : > { %5670 = vmatprep.subr.mxu0 %v6213_v2 }
 0x12a   : > { %5671 = vmatpush3.msra.mxu0 %v6421_v16 }
 0x12b   : > { %5686 = vmatprep.subr.mxu0 %v6213_v2  ;;  %5673 = vmatmul.mubr.msk.f32.vlgmr.msra.gmra.mxu0 %vm279_vm0, %v6733_v58 }
 0x12c   : > { %5687 = vmatpush3.msra.mxu0 %v6441_v18  ;;  %5694 = vmatprep.mubr.msk.f32.mxu0 %vm6214_vm1, %v6213_v2 }
 0x12d   : > { %5688 = vmatprep.subr.mxu0 %v6213_v2 }
 0x12e   : > { %5689 = vmatpush3.msra.mxu0 %v6457_v20 }
 0x12f   : > { %5690 = vmatprep.subr.mxu0 %v6213_v2 }
 0x130   : > { %5691 = vmatpush3.msra.mxu0 %v6471_v22 }
 0x131   : > { %5692 = vmatprep.subr.mxu0 %v6213_v2 }
 0x132   : > { %5693 = vmatpush3.msra.mxu0 %v6485_v24 }
 0x133   : > { %5708 = vmatprep.subr.mxu0 %v6213_v2  ;;  %5695 = vmatmul.mubr.msk.f32.vlgmr.msra.gmra.mxu0 %vm279_vm0, %v6733_v58 }
 0x134   : > { %5709 = vmatpush3.msra.mxu0 %v6505_v26  ;;  %5716 = vmatprep.mubr.msk.f32.mxu0 %vm6214_vm1, %v6213_v2 }
 0x135   : > { %5710 = vmatprep.subr.mxu0 %v6213_v2 }
 0x136   : > { %5711 = vmatpush3.msra.mxu0 %v6521_v28 }
 0x137   : > { %5712 = vmatprep.subr.mxu0 %v6213_v2 }
 0x138   : > { %5713 = vmatpush3.msra.mxu0 %v6535_v30 }
 0x139   : > { %5714 = vmatprep.subr.mxu0 %v6213_v2 }
 0x13a   : > { %5715 = vmatpush3.msra.mxu0 %v6549_v32 }
 0x13b   : > { %5730 = vmatprep.subr.mxu0 %v6213_v2  ;;  %5717 = vmatmul.mubr.msk.f32.vlgmr.msra.gmra.mxu0 %vm279_vm0, %v6733_v58 }
 0x13c   : > { %5731 = vmatpush3.msra.mxu0 %v6569_v34  ;;  %5738 = vmatprep.mubr.msk.f32.mxu0 %vm6214_vm1, %v6213_v2 }
 0x13d   : > { %5732 = vmatprep.subr.mxu0 %v6213_v2 }
 0x13e   : > { %5733 = vmatpush3.msra.mxu0 %v6585_v36 }
 0x13f   : > { %5734 = vmatprep.subr.mxu0 %v6213_v2 }
 0x140   : > { %5735 = vmatpush3.msra.mxu0 %v6599_v38 }
 0x141   : > { %5736 = vmatprep.subr.mxu0 %v6213_v2 }
 0x142   : > { %5737 = vmatpush3.msra.mxu0 %v6613_v40 }
 0x143   : > { %5752 = vmatprep.subr.mxu0 %v6213_v2  ;;  %5739 = vmatmul.mubr.msk.f32.vlgmr.msra.gmra.mxu0 %vm279_vm0, %v6733_v58 }
 0x144   : > { %5753 = vmatpush3.msra.mxu0 %v6633_v42  ;;  %5760 = vmatprep.mubr.msk.f32.mxu0 %vm6214_vm1, %v6213_v2 }
 0x145   : > { %5754 = vmatprep.subr.mxu0 %v6213_v2 }
 0x146   : > { %5755 = vmatpush3.msra.mxu0 %v6649_v44 }
 0x147   : > { %5756 = vmatprep.subr.mxu0 %v6213_v2 }
 0x148   : > { %5757 = vmatpush3.msra.mxu0 %v6663_v46 }
 0x149   : > { %5758 = vmatprep.subr.mxu0 %v6213_v2 }
 0x14a   : > { %5759 = vmatpush3.msra.mxu0 %v6677_v48 }
 0x14b   : > { %5761 = vmatmul.mubr.msk.f32.vlgmr.msra.gmra.mxu0 %vm279_vm0, %v6733_v58  ;;  %5774 = vmatprep.subr.mxu0 %v6213_v2 }
 0x14c   : > { %5776 = vmatprep.mubr.msk.f32.mxu0 %vm6214_vm1, %v6213_v2 }
 0x1db   : > { %v1265_v63 = vpop.f32.mrf.mxu0 }
 0x1dc   : > { %v1269_v50 = vmul.f32 0.35355338, %v1265_v63 }
 0x1dd   : > { %v5636_v51 = vpop.f32.mrf.mxu0 }
 0x1de   : > { %v1270_v52 = vsel %vm1192_vm3, %v1269_v50, -inf }
 0x1df   : > { %1271 = vmax.xlane.f32.xlu0 %v1270_v52 }
 0x1e3   : > { %v1428_v62 = vpop.f32.mrf.mxu0 }
 0x1e4   : > { %1432 = vst.msk [vmem:[#allocation2] sm:$0x3] %vm353_vm2, %v1428_v62 }
 0x1e5   : > { %v5652_v63 = vpop.f32.mrf.mxu0 }
 0x268   : > { %v1272_v53 = vpop.xlane.xlu0 %1271 }
 0x269   : > { %v1273_v54 = vsub.f32 %v1269_v50, %v1272_v53  ;;  %v1578_v50 = vpop.f32.mrf.mxu0 }
 0x26a   : > { %1582 = vst.msk [vmem:[#allocation4] sm:$0x3] %vm353_vm2, %v1578_v50 }
 0x26b   : > { %v1274_v55 = vmul.f32 1.442695, %v1273_v54  ;;  %v5674_v51 = vpop.f32.mrf.mxu0 }
 0x26d   : > { %6134 = vpow2.f32 %v1274_v55  ;;  %v1728_v52 = vpop.f32.mrf.mxu0 }
 0x26e   : > { %1732 = vst.msk [vmem:[#allocation3 + $0x2] sm:$0x3] %vm353_vm2, %v1728_v52 }
 0x26f   : > { %v5696_v53 = vpop.f32.mrf.mxu0 }
 0x271   : > { %v1878_v54 = vpop.f32.mrf.mxu0 }
 0x272   : > { %1882 = vst.msk [vmem:[#allocation2 + $0x4] sm:$0x3] %vm353_vm2, %v1878_v54 }
 0x273   : > { %v5718_v55 = vpop.f32.mrf.mxu0 }
 0x27a   : > { %v6135_v56 = vpop.eup %6134 }
 0x27b   : > { %v1276_v57 = vsel %vm1192_vm3, %v6135_v56, 0.0 }
 0x27c   : > { %1277 = vadd.xlane.f32.xlu0 %v1276_v57 }
 0x305   : > { %v1278_v59 = vpop.xlane.xlu0 %1277 }
 0x306   : > { %6136 = vrcp.f32 %v1278_v59 }
 0x313   : > { %v6137_v60 = vpop.eup %6136 }
 0x314   : > { %v1280_v61 = vmul.f32 %v6137_v60, %v6135_v56  ;;  %v2028_v56 = vpop.f32.mrf.mxu0 }
 0x315   : > { %2032 = vst.msk [vmem:[#allocation4 + $0x4] sm:$0x3] %vm353_vm2, %v2028_v56 }
 0x316   : > { %5640 = vmatmul.mubr.msk.f32.vlgmr.msra.gmra.mxu1 %vm1192_vm3, %v1280_v61  ;;  %v5740_v57 = vpop.f32.mrf.mxu0 }
 0x317   : > { %5654 = vmatpush3.msra.mxu1 %v6312_v1  ;;  %5661 = vmatprep.mubr.msk.f32.mxu1 %vm6214_vm1, %v6213_v2 }
 0x318   : > { %5655 = vmatprep.subr.mxu1 %v6213_v2 }
 0x319   : > { %5656 = vmatpush3.msra.mxu1 %v6325_v4 }
 0x31a   : > { %5657 = vmatprep.subr.mxu1 %v6213_v2 }
 0x31b   : > { %5658 = vmatpush3.msra.mxu1 %v6340_v6 }
 0x31c   : > { %5659 = vmatprep.subr.mxu1 %v6213_v2 }
 0x31d   : > { %5660 = vmatpush3.msra.mxu1 %v6361_v8 }
 0x31e   : > { %5662 = vmatmul.mubr.msk.f32.vlgmr.msra.gmra.mxu1 %vm279_vm0, %v6733_v58  ;;  %5675 = vmatprep.subr.mxu1 %v6213_v2 }
 0x31f   : > { %5676 = vmatpush3.msra.mxu1 %v6382_v11  ;;  %5683 = vmatprep.mubr.msk.f32.mxu1 %vm6214_vm1, %v6213_v2 }
 0x320   : > { %5677 = vmatprep.subr.mxu1 %v6213_v2 }
 0x321   : > { %5678 = vmatpush3.msra.mxu1 %v6398_v13 }
 0x322   : > { %5679 = vmatprep.subr.mxu1 %v6213_v2 }
 0x323   : > { %5680 = vmatpush3.msra.mxu1 %v6412_v15 }
 0x324   : > { %5681 = vmatprep.subr.mxu1 %v6213_v2 }
 0x325   : > { %5682 = vmatpush3.msra.mxu1 %v6428_v17 }
 0x326   : > { %5684 = vmatmul.mubr.msk.f32.vlgmr.msra.gmra.mxu1 %vm279_vm0, %v6733_v58  ;;  %5697 = vmatprep.subr.mxu1 %v6213_v2 }
 0x327   : > { %5698 = vmatpush3.msra.mxu1 %v6446_v19  ;;  %5705 = vmatprep.mubr.msk.f32.mxu1 %vm6214_vm1, %v6213_v2 }
 0x328   : > { %5699 = vmatprep.subr.mxu1 %v6213_v2 }
 0x329   : > { %5700 = vmatpush3.msra.mxu1 %v6462_v21 }
 0x32a   : > { %5701 = vmatprep.subr.mxu1 %v6213_v2 }
 0x32b   : > { %5702 = vmatpush3.msra.mxu1 %v6476_v23 }
 0x32c   : > { %5703 = vmatprep.subr.mxu1 %v6213_v2 }
 0x32d   : > { %5704 = vmatpush3.msra.mxu1 %v6492_v25 }
 0x32e   : > { %5706 = vmatmul.mubr.msk.f32.vlgmr.msra.gmra.mxu1 %vm279_vm0, %v6733_v58  ;;  %5719 = vmatprep.subr.mxu1 %v6213_v2 }
 0x32f   : > { %5720 = vmatpush3.msra.mxu1 %v6510_v27  ;;  %5727 = vmatprep.mubr.msk.f32.mxu1 %vm6214_vm1, %v6213_v2 }
 0x330   : > { %5721 = vmatprep.subr.mxu1 %v6213_v2 }
 0x331   : > { %5722 = vmatpush3.msra.mxu1 %v6526_v29 }
 0x332   : > { %5723 = vmatprep.subr.mxu1 %v6213_v2 }
 0x333   : > { %5724 = vmatpush3.msra.mxu1 %v6540_v31 }
 0x334   : > { %5725 = vmatprep.subr.mxu1 %v6213_v2 }
 0x335   : > { %5726 = vmatpush3.msra.mxu1 %v6556_v33 }
 0x336   : > { %5728 = vmatmul.mubr.msk.f32.vlgmr.msra.gmra.mxu1 %vm279_vm0, %v6733_v58  ;;  %5741 = vmatprep.subr.mxu1 %v6213_v2 }
 0x337   : > { %5742 = vmatpush3.msra.mxu1 %v6574_v35  ;;  %5749 = vmatprep.mubr.msk.f32.mxu1 %vm6214_vm1, %v6213_v2 }
 0x338   : > { %5743 = vmatprep.subr.mxu1 %v6213_v2 }
 0x339   : > { %5744 = vmatpush3.msra.mxu1 %v6590_v37 }
 0x33a   : > { %5745 = vmatprep.subr.mxu1 %v6213_v2 }
 0x33b   : > { %5746 = vmatpush3.msra.mxu1 %v6604_v39 }
 0x33c   : > { %5747 = vmatprep.subr.mxu1 %v6213_v2 }
 0x33d   : > { %5748 = vmatpush3.msra.mxu1 %v6620_v41 }
 0x33e   : > { %5750 = vmatmul.mubr.msk.f32.vlgmr.msra.gmra.mxu1 %vm279_vm0, %v6733_v58  ;;  %5763 = vmatprep.subr.mxu1 %v6213_v2 }
 0x33f   : > { %5764 = vmatpush3.msra.mxu1 %v6638_v43  ;;  %5771 = vmatprep.mubr.msk.f32.mxu1 %vm6214_vm1, %v6213_v2 }
 0x340   : > { %5765 = vmatprep.subr.mxu1 %v6213_v2 }
 0x341   : > { %5766 = vmatpush3.msra.mxu1 %v6654_v45 }
 0x342   : > { %5767 = vmatprep.subr.mxu1 %v6213_v2 }
 0x343   : > { %5768 = vmatpush3.msra.mxu1 %v6668_v47 }
 0x344   : > { %5769 = vmatprep.subr.mxu1 %v6213_v2 }
 0x345   : > { %5770 = vmatpush3.msra.mxu1 %v6684_v49 }
 0x346   : > { %5772 = vmatmul.mubr.msk.f32.vlgmr.msra.gmra.mxu1 %vm279_vm0, %v6733_v58  ;;  %5779 = vmatprep.subr.mxu1 %v6213_v2  ;;  %v2178_v58 = vpop.f32.mrf.mxu0 }
 0x347   : > { %5781 = vmatprep.mubr.msk.f32.mxu1 %vm6214_vm1, %v6213_v2  ;;  %2182 = vst.msk [vmem:[#allocation3 + $0x6] sm:$0x3] %vm353_vm2, %v2178_v58 }
 0x348   : > { %v5762_v59 = vpop.f32.mrf.mxu0 }
 0x3d6   : > { %v1350_v60 = vpop.f32.mrf.mxu1 }
 0x3d8   : > { %v5641_v61 = vpop.f32.mrf.mxu1 }
 0x3de   : > { %v1503_v62 = vpop.f32.mrf.mxu1 }
 0x3df   : > { %1507 = vst.msk [vmem:[#allocation3] sm:$0x3] %vm353_vm2, %v1503_v62 }
 0x3e0   : > { %v5663_v63 = vpop.f32.mrf.mxu1 }
 0x3e6   : > { %v1653_v50 = vpop.f32.mrf.mxu1 }
 0x3e7   : > { %1657 = vst.msk [vmem:[#allocation2 + $0x2] sm:$0x3] %vm353_vm2, %v1653_v50 }
 0x3e8   : > { %v5685_v51 = vpop.f32.mrf.mxu1 }
 0x3ee   : > { %v1803_v52 = vpop.f32.mrf.mxu1 }
 0x3ef   : > { %1807 = vst.msk [vmem:[#allocation4 + $0x2] sm:$0x3] %vm353_vm2, %v1803_v52 }
 0x3f0   : > { %v5707_v53 = vpop.f32.mrf.mxu1 }
 0x3f6   : > { %v1953_v54 = vpop.f32.mrf.mxu1 }
 0x3f7   : > { %1957 = vst.msk [vmem:[#allocation3 + $0x4] sm:$0x3] %vm353_vm2, %v1953_v54 }
 0x3f8   : > { %v5729_v55 = vpop.f32.mrf.mxu1 }
 0x3fe   : > { %v2103_v56 = vpop.f32.mrf.mxu1  ;;  %v2259_v57 = vld [vmem:[#allocation3] sm:$0xff] }
 0x3ff   : > { %2107 = vst.msk [vmem:[#allocation2 + $0x6] sm:$0x3] %vm353_vm2, %v2103_v56  ;;  %5775 = vmatpush3.xpose.msk.msra.mxu0 %vm1192_vm3, %v2259_v57 }
 0x400   : > { %v5751_v58 = vpop.f32.mrf.mxu1  ;;  %5784 = vmatprep.subr.mxu0 %v6213_v2 }
 0x406   : > { %v2253_v59 = vpop.f32.mrf.mxu1  ;;  %v2258_v61 = vld [vmem:[#allocation2] sm:$0xff] }
 0x407   : > { %2257 = vst.msk [vmem:[#allocation4 + $0x6] sm:$0x3] %vm353_vm2, %v2253_v59  ;;  %5777 = vmatmul.mubr.msk.f32.vlgmr.msra.gmra.mxu0 %vm1192_vm3, %v2258_v61  ;;  %v5119_v59 = vld [vmem:[%s7416_s4 + $0x8] sm:$0xff] }
 0x408   : > { %v5773_v62 = vpop.f32.mrf.mxu1  ;;  %5786 = vmatprep.mubr.msk.f32.mxu0 %vm6214_vm1, %v6213_v2  ;;  %5785 = vmatpush3.msra.mxu0 %v5119_v59  ;;  %v5185_v59 = vld [vmem:[%s7414_s2 + $0x30] sm:$0xff] }
 0x409   : > { %5794 = vmatprep.subr.mxu0 %v6213_v2 }
 0x40e   : > { %v2260_v63 = vld [vmem:[#allocation4] sm:$0xff] }
 0x40f   : > { %5780 = vmatpush3.msra.mxu1 %v2260_v63 }
 0x410   : > { %5789 = vmatprep.subr.mxu1 %v6213_v2 }
 0x4c7   : > { %v2333_v50 = vpop.f32.mrf.mxu0 }
 0x4c8   : > { %v2337_v51 = vmul.f32 0.35355338, %v2333_v50  ;;  %v1354_v50 = vld [vmem:[%s7416_s4] sm:$0xff] }
 0x4c9   : > { %v5778_v52 = vpop.f32.mrf.mxu0 }
 0x4ca   : > { %v2338_v53 = vsel %vm1192_vm3, %v2337_v51, -inf  ;;  %v6150_v52 = vld [vmem:[%s6354_s17] sm:$0xff]  ;;  %s4939_s17 = scalar_lea.sflag [#allocation6], %s267_s16 }
 0x4cb   : > { %2339 = vmax.xlane.f32.xlu1 %v2338_v53  ;;  %v7104_v53 = vrot.slane %v6150_v52, 6 }
 0x554   : > { %v2340_v54 = vpop.xlane.xlu1 %2339 }
 0x555   : > { %v2341_v55 = vsub.f32 %v2337_v51, %v2340_v54  ;;  %v3713_v51 = vld [vmem:[%s7413_s1] sm:$0xff]  ;;  %v3869_v54 = vld [vmem:[%s7415_s3 + $0x18] sm:$0xff] }
 0x557   : > { %v2342_v56 = vmul.f32 1.442695, %v2341_v55  ;;  %v3868_v55 = vld [vmem:[%s7415_s3 + $0x10] sm:$0xff] }
 0x559   : > { %6138 = vpow2.f32 %v2342_v56  ;;  %v3867_v56 = vld [vmem:[%s7415_s3 + $0x8] sm:$0xff] }
 0x566   : > { %v6139_v57 = vpop.eup %6138 }
 0x567   : > { %v2344_v58 = vsel %vm1192_vm3, %v6139_v57, 0.0 }
 0x568   : > { %2345 = vadd.xlane.f32.xlu1 %v2344_v58  ;;  %v5186_v58 = vld [vmem:[%s7414_s2 + $0x38] sm:$0xff] }
 0x5f1   : > { %v2346_v61 = vpop.xlane.xlu1 %2345 }
 0x5f2   : > { %6140 = vrcp.f32 %v2346_v61  ;;  %v5184_v61 = vld [vmem:[%s7414_s2 + $0x28] sm:$0xff] }
 0x5ff   : > { %v6141_v62 = vpop.eup %6140 }
 0x600   : > { %v2348_v63 = vmul.f32 %v6141_v62, %v6139_v57  ;;  %v3866_v57 = vld [vmem:[%s7415_s3] sm:$0xff] }
 0x601   : > { %v5183_v62 = vld [vmem:[%s7414_s2 + $0x20] sm:$0xff] }
 0x602   : > { %5782 = vmatmul.mubr.msk.f32.vlgmr.msra.gmra.mxu1 %vm1192_vm3, %v2348_v63  ;;  %v5196_v63 = vld [vmem:[%s7413_s1 + $0x58] sm:$0xff] }
 0x603   : > { %5790 = vmatpush3.msra.mxu1 %v1354_v50  ;;  %5791 = vmatprep.mubr.msk.f32.mxu1 %vm6214_vm1, %v6213_v2  ;;  %v5195_v50 = vld [vmem:[%s7413_s1 + $0x50] sm:$0xff] }
 0x604   : > { %5805 = vmatprep.subr.mxu1 %v6213_v2 }
 0x606   : > { %5792 = vmatmul.mubr.msk.f32.vlgmr.msra.gmra.mxu1 %vm1192_vm3, %v1350_v60  ;;  %v6917_v60 = vrot.slane %v6364_v9, 4 }
 0x607   : > { %5806 = vmatpush3.msra.mxu1 %v6312_v1  ;;  %5813 = vmatprep.mubr.msk.f32.mxu1 %vm6214_vm1, %v6213_v2 }
 0x608   : > { %5807 = vmatprep.subr.mxu1 %v6213_v2 }
 0x609   : > { %5808 = vmatpush3.msra.mxu1 %v6325_v4 }
 0x60a   : > { %5809 = vmatprep.subr.mxu1 %v6213_v2 }
 0x60b   : > { %5810 = vmatpush3.msra.mxu1 %v6340_v6 }
 0x60c   : > { %5811 = vmatprep.subr.mxu1 %v6213_v2 }
 0x60d   : > { %5812 = vmatpush3.msra.mxu1 %v6361_v8 }
 0x60e   : > { %5827 = vmatprep.subr.mxu1 %v6213_v2  ;;  %5814 = vmatmul.mubr.msk.f32.vlgmr.msra.gmra.mxu1 %vm279_vm0, %v6917_v60 }
 0x60f   : > { %5828 = vmatpush3.msra.mxu1 %v6382_v11  ;;  %5835 = vmatprep.mubr.msk.f32.mxu1 %vm6214_vm1, %v6213_v2 }
 0x610   : > { %5829 = vmatprep.subr.mxu1 %v6213_v2 }
 0x611   : > { %5830 = vmatpush3.msra.mxu1 %v6398_v13 }
 0x612   : > { %5831 = vmatprep.subr.mxu1 %v6213_v2 }
 0x613   : > { %5832 = vmatpush3.msra.mxu1 %v6412_v15 }
 0x614   : > { %5833 = vmatprep.subr.mxu1 %v6213_v2 }
 0x615   : > { %5834 = vmatpush3.msra.mxu1 %v6428_v17 }
 0x616   : > { %5849 = vmatprep.subr.mxu1 %v6213_v2  ;;  %5836 = vmatmul.mubr.msk.f32.vlgmr.msra.gmra.mxu1 %vm279_vm0, %v6917_v60 }
 0x617   : > { %5850 = vmatpush3.msra.mxu1 %v6446_v19  ;;  %5857 = vmatprep.mubr.msk.f32.mxu1 %vm6214_vm1, %v6213_v2 }
 0x618   : > { %5851 = vmatprep.subr.mxu1 %v6213_v2 }
 0x619   : > { %5852 = vmatpush3.msra.mxu1 %v6462_v21 }
 0x61a   : > { %5853 = vmatprep.subr.mxu1 %v6213_v2 }
 0x61b   : > { %5854 = vmatpush3.msra.mxu1 %v6476_v23 }
 0x61c   : > { %5855 = vmatprep.subr.mxu1 %v6213_v2 }
 0x61d   : > { %5856 = vmatpush3.msra.mxu1 %v6492_v25 }
 0x61e   : > { %5871 = vmatprep.subr.mxu1 %v6213_v2  ;;  %5858 = vmatmul.mubr.msk.f32.vlgmr.msra.gmra.mxu1 %vm279_vm0, %v6917_v60 }
 0x61f   : > { %5872 = vmatpush3.msra.mxu1 %v6510_v27  ;;  %5879 = vmatprep.mubr.msk.f32.mxu1 %vm6214_vm1, %v6213_v2 }
 0x620   : > { %5873 = vmatprep.subr.mxu1 %v6213_v2 }
 0x621   : > { %5874 = vmatpush3.msra.mxu1 %v6526_v29 }
 0x622   : > { %5875 = vmatprep.subr.mxu1 %v6213_v2 }
 0x623   : > { %5876 = vmatpush3.msra.mxu1 %v6540_v31 }
 0x624   : > { %5877 = vmatprep.subr.mxu1 %v6213_v2 }
 0x625   : > { %5878 = vmatpush3.msra.mxu1 %v6556_v33 }
 0x626   : > { %5893 = vmatprep.subr.mxu1 %v6213_v2  ;;  %5880 = vmatmul.mubr.msk.f32.vlgmr.msra.gmra.mxu1 %vm279_vm0, %v6917_v60 }
 0x627   : > { %5894 = vmatpush3.msra.mxu1 %v6574_v35  ;;  %5901 = vmatprep.mubr.msk.f32.mxu1 %vm6214_vm1, %v6213_v2 }
 0x628   : > { %5895 = vmatprep.subr.mxu1 %v6213_v2 }
 0x629   : > { %5896 = vmatpush3.msra.mxu1 %v6590_v37 }
 0x62a   : > { %5897 = vmatprep.subr.mxu1 %v6213_v2 }
 0x62b   : > { %5898 = vmatpush3.msra.mxu1 %v6604_v39 }
 0x62c   : > { %5899 = vmatprep.subr.mxu1 %v6213_v2 }
 0x62d   : > { %5900 = vmatpush3.msra.mxu1 %v6620_v41 }
 0x62e   : > { %5902 = vmatmul.mubr.msk.f32.vlgmr.msra.gmra.mxu1 %vm279_vm0, %v6917_v60  ;;  %5915 = vmatprep.subr.mxu1 %v6213_v2 }
 0x62f   : > { %5916 = vmatpush3.msra.mxu1 %v6638_v43  ;;  %5923 = vmatprep.mubr.msk.f32.mxu1 %vm6214_vm1, %v6213_v2  ;;  %v5173_v43 = vld [vmem:[%s7416_s4 + $0x10] sm:$0xff] }
 0x630   : > { %5917 = vmatprep.subr.mxu1 %v6213_v2 }
 0x631   : > { %5918 = vmatpush3.msra.mxu1 %v6654_v45 }
 0x632   : > { %5919 = vmatprep.subr.mxu1 %v6213_v2 }
 0x633   : > { %5920 = vmatpush3.msra.mxu1 %v6668_v47  ;;  %v3716_v47 = vld [vmem:[%s7413_s1 + $0x18] sm:$0xff] }
 0x634   : > { %5921 = vmatprep.subr.mxu1 %v6213_v2 }
 0x635   : > { %5922 = vmatpush3.msra.mxu1 %v6684_v49  ;;  %v3714_v49 = vld [vmem:[%s7413_s1 + $0x8] sm:$0xff] }
 0x636   : > { %5924 = vmatmul.mubr.msk.f32.vlgmr.msra.gmra.mxu1 %vm279_vm0, %v6917_v60  ;;  %5931 = vmatprep.subr.mxu1 %v6213_v2 }
 0x637   : > { %5933 = vmatprep.mubr.msk.f32.mxu1 %vm6214_vm1, %v6213_v2 }
 0x6c2   : > { %v2418_v1 = vpop.f32.mrf.mxu1 }
 0x6c3   : > { %5787 = vmatmul.mubr.msk.f32.vlgmr.msra.gmra.mxu0 %vm1192_vm3, %v2418_v1  ;;  %v5193_v1 = vld [vmem:[%s7413_s1 + $0x40] sm:$0xff] }
 0x6c4   : > { %5795 = vmatpush3.msra.mxu0 %v6307_v0  ;;  %v5783_v4 = vpop.f32.mrf.mxu1  ;;  %5802 = vmatprep.mubr.msk.f32.mxu0 %vm6214_vm1, %v6213_v2 }
 0x6c5   : > { %5796 = vmatprep.subr.mxu0 %v6213_v2  ;;  %v5206_v4 = vld [vmem:[%s7415_s3 + $0x58] sm:$0xff] }
 0x6c6   : > { %5797 = vmatpush3.msra.mxu0 %v6320_v3  ;;  %v6989_v6 = vpop.f32.mrf.mxu1 }
 0x6c7   : > { %5798 = vmatprep.subr.mxu0 %v6213_v2 }
 0x6c8   : > { %5799 = vmatpush3.msra.mxu0 %v6335_v5  ;;  %v5793_v8 = vpop.f32.mrf.mxu1 }
 0x6c9   : > { %5800 = vmatprep.subr.mxu0 %v6213_v2  ;;  %v5205_v8 = vld [vmem:[%s7415_s3 + $0x50] sm:$0xff] }
 0x6ca   : > { %5801 = vmatpush3.msra.mxu0 %v6349_v7 }
 0x6cb   : > { %5803 = vmatmul.mubr.msk.f32.vlgmr.msra.gmra.mxu0 %vm279_vm0, %v6917_v60  ;;  %5816 = vmatprep.subr.mxu0 %v6213_v2 }
 0x6cc   : > { %5817 = vmatpush3.msra.mxu0 %v6377_v10  ;;  %5824 = vmatprep.mubr.msk.f32.mxu0 %vm6214_vm1, %v6213_v2 }
 0x6cd   : > { %5818 = vmatprep.subr.mxu0 %v6213_v2 }
 0x6ce   : > { %5819 = vmatpush3.msra.mxu0 %v6393_v12  ;;  %v2718_v0 = vpop.f32.mrf.mxu1 }
 0x6cf   : > { %5820 = vmatprep.subr.mxu0 %v6213_v2  ;;  %2722 = vst.msk [vmem:[#allocation3] sm:$0x3] %vm353_vm2, %v2718_v0  ;;  %v5204_v0 = vld [vmem:[%s7415_s3 + $0x48] sm:$0xff] }
 0x6d0   : > { %5821 = vmatpush3.msra.mxu0 %v6407_v14  ;;  %v5815_v3 = vpop.f32.mrf.mxu1 }
 0x6d1   : > { %5822 = vmatprep.subr.mxu0 %v6213_v2  ;;  %v5203_v3 = vld [vmem:[%s7415_s3 + $0x40] sm:$0xff] }
 0x6d2   : > { %5823 = vmatpush3.msra.mxu0 %v6421_v16 }
 0x6d3   : > { %5825 = vmatmul.mubr.msk.f32.vlgmr.msra.gmra.mxu0 %vm279_vm0, %v6917_v60  ;;  %5838 = vmatprep.subr.mxu0 %v6213_v2 }
 0x6d4   : > { %5839 = vmatpush3.msra.mxu0 %v6441_v18  ;;  %5846 = vmatprep.mubr.msk.f32.mxu0 %vm6214_vm1, %v6213_v2 }
 0x6d5   : > { %5840 = vmatprep.subr.mxu0 %v6213_v2 }
 0x6d6   : > { %5841 = vmatpush3.msra.mxu0 %v6457_v20  ;;  %v2868_v5 = vpop.f32.mrf.mxu1 }
 0x6d7   : > { %5842 = vmatprep.subr.mxu0 %v6213_v2  ;;  %2872 = vst.msk [vmem:[#allocation2 + $0x2] sm:$0x3] %vm353_vm2, %v2868_v5  ;;  %v5216_v5 = vld [vmem:[%s7414_s2 + $0x78] sm:$0xff] }
 0x6d8   : > { %5843 = vmatpush3.msra.mxu0 %v6471_v22  ;;  %v5837_v7 = vpop.f32.mrf.mxu1 }
 0x6d9   : > { %5844 = vmatprep.subr.mxu0 %v6213_v2  ;;  %v5215_v7 = vld [vmem:[%s7414_s2 + $0x70] sm:$0xff] }
 0x6da   : > { %5845 = vmatpush3.msra.mxu0 %v6485_v24 }
 0x6db   : > { %5847 = vmatmul.mubr.msk.f32.vlgmr.msra.gmra.mxu0 %vm279_vm0, %v6917_v60  ;;  %5860 = vmatprep.subr.mxu0 %v6213_v2 }
 0x6dc   : > { %5861 = vmatpush3.msra.mxu0 %v6505_v26  ;;  %5868 = vmatprep.mubr.msk.f32.mxu0 %vm6214_vm1, %v6213_v2 }
 0x6dd   : > { %5862 = vmatprep.subr.mxu0 %v6213_v2 }
 0x6de   : > { %5863 = vmatpush3.msra.mxu0 %v6521_v28  ;;  %v3018_v9 = vpop.f32.mrf.mxu1 }
 0x6df   : > { %5864 = vmatprep.subr.mxu0 %v6213_v2  ;;  %3022 = vst.msk [vmem:[#allocation4 + $0x2] sm:$0x3] %vm353_vm2, %v3018_v9  ;;  %v5214_v9 = vld [vmem:[%s7414_s2 + $0x68] sm:$0xff] }
 0x6e0   : > { %5865 = vmatpush3.msra.mxu0 %v6535_v30  ;;  %v5859_v10 = vpop.f32.mrf.mxu1 }
 0x6e1   : > { %5866 = vmatprep.subr.mxu0 %v6213_v2  ;;  %v5213_v10 = vld [vmem:[%s7414_s2 + $0x60] sm:$0xff] }
 0x6e2   : > { %5867 = vmatpush3.msra.mxu0 %v6549_v32 }
 0x6e3   : > { %5869 = vmatmul.mubr.msk.f32.vlgmr.msra.gmra.mxu0 %vm279_vm0, %v6917_v60  ;;  %5882 = vmatprep.subr.mxu0 %v6213_v2 }
 0x6e4   : > { %5883 = vmatpush3.msra.mxu0 %v6569_v34  ;;  %5890 = vmatprep.mubr.msk.f32.mxu0 %vm6214_vm1, %v6213_v2 }
 0x6e5   : > { %5884 = vmatprep.subr.mxu0 %v6213_v2 }
 0x6e6   : > { %5885 = vmatpush3.msra.mxu0 %v6585_v36  ;;  %v3168_v11 = vpop.f32.mrf.mxu1 }
 0x6e7   : > { %5886 = vmatprep.subr.mxu0 %v6213_v2  ;;  %3172 = vst.msk [vmem:[#allocation3 + $0x4] sm:$0x3] %vm353_vm2, %v3168_v11  ;;  %v3794_v11 = vld [vmem:[%s7414_s2 + $0x18] sm:$0xff] }
 0x6e8   : > { %5887 = vmatpush3.msra.mxu0 %v6599_v38  ;;  %v5881_v12 = vpop.f32.mrf.mxu1 }
 0x6e9   : > { %5888 = vmatprep.subr.mxu0 %v6213_v2 }
 0x6ea   : > { %5889 = vmatpush3.msra.mxu0 %v6613_v40 }
 0x6eb   : > { %5891 = vmatmul.mubr.msk.f32.vlgmr.msra.gmra.mxu0 %vm279_vm0, %v6917_v60  ;;  %5904 = vmatprep.subr.mxu0 %v6213_v2 }
 0x6ec   : > { %5905 = vmatpush3.msra.mxu0 %v6633_v42  ;;  %5912 = vmatprep.mubr.msk.f32.mxu0 %vm6214_vm1, %v6213_v2 }
 0x6ed   : > { %5906 = vmatprep.subr.mxu0 %v6213_v2 }
 0x6ee   : > { %5907 = vmatpush3.msra.mxu0 %v6649_v44  ;;  %v3318_v13 = vpop.f32.mrf.mxu1 }
 0x6ef   : > { %5908 = vmatprep.subr.mxu0 %v6213_v2  ;;  %3322 = vst.msk [vmem:[#allocation2 + $0x6] sm:$0x3] %vm353_vm2, %v3318_v13  ;;  %v3793_v13 = vld [vmem:[%s7414_s2 + $0x10] sm:$0xff] }
 0x6f0   : > { %5909 = vmatpush3.msra.mxu0 %v6663_v46  ;;  %v5903_v14 = vpop.f32.mrf.mxu1 }
 0x6f1   : > { %5910 = vmatprep.subr.mxu0 %v6213_v2 }
 0x6f2   : > { %5911 = vmatpush3.msra.mxu0 %v6677_v48  ;;  %v3715_v48 = vld [vmem:[%s7413_s1 + $0x10] sm:$0xff] }
 0x6f3   : > { %5913 = vmatmul.mubr.msk.f32.vlgmr.msra.gmra.mxu0 %vm279_vm0, %v6917_v60  ;;  %5926 = vmatprep.subr.mxu0 %v6213_v2  ;;  %v5194_v60 = vld [vmem:[%s7413_s1 + $0x48] sm:$0xff] }
 0x6f4   : > { %5928 = vmatprep.mubr.msk.f32.mxu0 %vm6214_vm1, %v6213_v2 }
 0x6f6   : > { %v3468_v15 = vpop.f32.mrf.mxu1 }
 0x6f7   : > { %3472 = vst.msk [vmem:[#allocation4 + $0x6] sm:$0x3] %vm353_vm2, %v3468_v15  ;;  %v3792_v15 = vld [vmem:[%s7414_s2 + $0x8] sm:$0xff] }
 0x6f8   : > { %v5925_v16 = vpop.f32.mrf.mxu1 }
 0x6f9   : > { %v3791_v16 = vld [vmem:[%s7414_s2] sm:$0xff] }
 0x783   : > { %v7066_v17 = vpop.f32.mrf.mxu0 }
 0x785   : > { %v5788_v18 = vpop.f32.mrf.mxu0 }
 0x786   : > { %v5181_v18 = vld [vmem:[%s7413_s1 + $0x38] sm:$0xff] }
 0x78b   : > { %v2643_v19 = vpop.f32.mrf.mxu0 }
 0x78c   : > { %2647 = vst.msk [vmem:[#allocation2] sm:$0x3] %vm353_vm2, %v2643_v19 }
 0x78d   : > { %v5804_v20 = vpop.f32.mrf.mxu0 }
 0x78e   : > { %v5180_v20 = vld [vmem:[%s7413_s1 + $0x30] sm:$0xff] }
 0x793   : > { %v2793_v21 = vpop.f32.mrf.mxu0 }
 0x794   : > { %2797 = vst.msk [vmem:[#allocation4] sm:$0x3] %vm353_vm2, %v2793_v21 }
 0x795   : > { %v5826_v22 = vpop.f32.mrf.mxu0 }
 0x796   : > { %v5179_v22 = vld [vmem:[%s7413_s1 + $0x28] sm:$0xff] }
 0x79b   : > { %v2943_v23 = vpop.f32.mrf.mxu0 }
 0x79c   : > { %2947 = vst.msk [vmem:[#allocation3 + $0x2] sm:$0x3] %vm353_vm2, %v2943_v23  ;;  %v5178_v23 = vld [vmem:[%s7413_s1 + $0x20] sm:$0xff] }
 0x79d   : > { %v5848_v24 = vpop.f32.mrf.mxu0 }
 0x79e   : > { %v5191_v24 = vld [vmem:[%s7415_s3 + $0x38] sm:$0xff] }
 0x7a3   : > { %v3093_v25 = vpop.f32.mrf.mxu0 }
 0x7a4   : > { %3097 = vst.msk [vmem:[#allocation2 + $0x4] sm:$0x3] %vm353_vm2, %v3093_v25  ;;  %v5190_v25 = vld [vmem:[%s7415_s3 + $0x30] sm:$0xff] }
 0x7a5   : > { %v5870_v26 = vpop.f32.mrf.mxu0 }
 0x7a6   : > { %v5189_v26 = vld [vmem:[%s7415_s3 + $0x28] sm:$0xff] }
 0x7ab   : > { %v3243_v27 = vpop.f32.mrf.mxu0  ;;  %v3473_v33 = vld [vmem:[#allocation2] sm:$0xff] }
 0x7ac   : > { %3247 = vst.msk [vmem:[#allocation4 + $0x4] sm:$0x3] %vm353_vm2, %v3243_v27  ;;  %v5188_v27 = vld [vmem:[%s7415_s3 + $0x20] sm:$0xff] }
 0x7ad   : > { %v5892_v28 = vpop.f32.mrf.mxu0 }
 0x7ae   : > { %v5201_v28 = vld [vmem:[%s7414_s2 + $0x58] sm:$0xff] }
 0x7b3   : > { %v3393_v29 = vpop.f32.mrf.mxu0  ;;  %v3475_v30 = vld [vmem:[#allocation4] sm:$0xff] }
 0x7b4   : > { %3397 = vst.msk [vmem:[#allocation3 + $0x6] sm:$0x3] %vm353_vm2, %v3393_v29  ;;  %5932 = vmatpush3.msra.mxu1 %v3475_v30  ;;  %v5200_v29 = vld [vmem:[%s7414_s2 + $0x50] sm:$0xff]  ;;  %v5199_v30 = vld [vmem:[%s7414_s2 + $0x48] sm:$0xff] }
 0x7b5   : > { %v5914_v31 = vpop.f32.mrf.mxu0  ;;  %5941 = vmatprep.subr.mxu1 %v6213_v2 }
 0x7b6   : > { %v5198_v31 = vld [vmem:[%s7414_s2 + $0x40] sm:$0xff] }
 0x7bb   : > { %v3474_v32 = vld [vmem:[#allocation3] sm:$0xff] }
 0x7bc   : > { %5927 = vmatpush3.xpose.msk.msra.mxu0 %vm1192_vm3, %v3474_v32  ;;  %v5211_v32 = vld [vmem:[%s7413_s1 + $0x78] sm:$0xff] }
 0x7bd   : > { %5936 = vmatprep.subr.mxu0 %v6213_v2 }
 0x7bf   : > { %5929 = vmatmul.mubr.msk.f32.vlgmr.msra.gmra.mxu0 %vm1192_vm3, %v3473_v33  ;;  %v5210_v33 = vld [vmem:[%s7413_s1 + $0x70] sm:$0xff] }
 0x7c0   : > { %5938 = vmatprep.mubr.msk.f32.mxu0 %vm6214_vm1, %v6213_v2  ;;  %5937 = vmatpush3.msra.mxu0 %v5173_v43 }
 0x7c1   : > { %5952 = vmatprep.subr.mxu0 %v6213_v2 }
 0x87f   : > { %v3548_v34 = vpop.f32.mrf.mxu0 }
 0x880   : > { %v3552_v35 = vmul.f32 0.35355338, %v3548_v34  ;;  %v5209_v34 = vld [vmem:[%s7413_s1 + $0x68] sm:$0xff] }
 0x881   : > { %v5930_v36 = vpop.f32.mrf.mxu0 }
 0x882   : > { %v3553_v37 = vsel %vm1192_vm3, %v3552_v35, -inf  ;;  %v5221_v36 = vld [vmem:[%s7415_s3 + $0x78] sm:$0xff] }
 0x883   : > { %3554 = vmax.xlane.f32.xlu0 %v3553_v37  ;;  %v5220_v37 = vld [vmem:[%s7415_s3 + $0x70] sm:$0xff] }
 0x90c   : > { %v3555_v38 = vpop.xlane.xlu0 %3554 }
 0x90d   : > { %v3556_v39 = vsub.f32 %v3552_v35, %v3555_v38  ;;  %v5208_v35 = vld [vmem:[%s7413_s1 + $0x60] sm:$0xff]  ;;  %v5219_v38 = vld [vmem:[%s7415_s3 + $0x68] sm:$0xff] }
 0x90f   : > { %v3557_v40 = vmul.f32 1.442695, %v3556_v39  ;;  %v5218_v39 = vld [vmem:[%s7415_s3 + $0x60] sm:$0xff] }
 0x911   : > { %6142 = vpow2.f32 %v3557_v40 }
 0x91e   : > { %v6143_v41 = vpop.eup %6142 }
 0x91f   : > { %v3559_v42 = vsel %vm1192_vm3, %v6143_v41, 0.0 }
 0x920   : > { %3560 = vadd.xlane.f32.xlu1 %v3559_v42 }
 0x9a9   : > { %v3561_v44 = vpop.xlane.xlu1 %3560 }
 0x9aa   : > { %6144 = vrcp.f32 %v3561_v44 }
 0x9b7   : > { %v6145_v45 = vpop.eup %6144 }
 0x9b8   : > { %v3563_v46 = vmul.f32 %v6145_v45, %v6143_v41 }
 0x9ba   : > { %5934 = vmatmul.mubr.msk.f32.vlgmr.msra.gmra.mxu1 %vm1192_vm3, %v3563_v46 }
 0x9bb   : > { %5942 = vmatpush3.msra.mxu1 %v3716_v47  ;;  %5949 = vmatprep.mubr.msk.f32.mxu1 %vm6214_vm1, %v6213_v2 }
 0x9bc   : > { %5943 = vmatprep.subr.mxu1 %v6213_v2 }
 0x9bd   : > { %5944 = vmatpush3.msra.mxu1 %v3715_v48 }
 0x9be   : > { %5945 = vmatprep.subr.mxu1 %v6213_v2 }
 0x9bf   : > { %5946 = vmatpush3.msra.mxu1 %v3714_v49 }
 0x9c0   : > { %5947 = vmatprep.subr.mxu1 %v6213_v2 }
 0x9c1   : > { %5948 = vmatpush3.msra.mxu1 %v3713_v51  ;;  %v2567_v51 = vadd.f32 %v6989_v6, %v7066_v17 }
 0x9c2   : > { %5963 = vmatprep.subr.mxu1 %v6213_v2  ;;  %5950 = vmatmul.mubr.msk.f32.vlgmr.msra.gmra.mxu1 %vm279_vm0, %v7104_v53 }
 0x9c3   : > { %5964 = vmatpush3.msra.mxu1 %v3869_v54  ;;  %5971 = vmatprep.mubr.msk.f32.mxu1 %vm6214_vm1, %v6213_v2 }
 0x9c4   : > { %5965 = vmatprep.subr.mxu1 %v6213_v2 }
 0x9c5   : > { %5966 = vmatpush3.msra.mxu1 %v3868_v55 }
 0x9c6   : > { %5967 = vmatprep.subr.mxu1 %v6213_v2 }
 0x9c7   : > { %5968 = vmatpush3.msra.mxu1 %v3867_v56 }
 0x9c8   : > { %5969 = vmatprep.subr.mxu1 %v6213_v2 }
 0x9c9   : > { %5970 = vmatpush3.msra.mxu1 %v3866_v57 }
 0x9ca   : > { %5985 = vmatprep.subr.mxu1 %v6213_v2  ;;  %5972 = vmatmul.mubr.msk.f32.vlgmr.msra.gmra.mxu1 %vm279_vm0, %v7104_v53 }
 0x9cb   : > { %5993 = vmatprep.mubr.msk.f32.mxu1 %vm6214_vm1, %v6213_v2  ;;  %5986 = vmatpush3.msra.mxu1 %v5186_v58 }
 0x9cc   : > { %5987 = vmatprep.subr.mxu1 %v6213_v2 }
 0x9cd   : > { %5988 = vmatpush3.msra.mxu1 %v5185_v59 }
 0x9ce   : > { %5989 = vmatprep.subr.mxu1 %v6213_v2 }
 0x9cf   : > { %5990 = vmatpush3.msra.mxu1 %v5184_v61 }
 0x9d0   : > { %5991 = vmatprep.subr.mxu1 %v6213_v2 }
 0x9d1   : > { %5992 = vmatpush3.msra.mxu1 %v5183_v62 }
 0x9d2   : > { %6007 = vmatprep.subr.mxu1 %v6213_v2  ;;  %5994 = vmatmul.mubr.msk.f32.vlgmr.msra.gmra.mxu1 %vm279_vm0, %v7104_v53 }
 0x9d3   : > { %6008 = vmatpush3.msra.mxu1 %v5196_v63  ;;  %6015 = vmatprep.mubr.msk.f32.mxu1 %vm6214_vm1, %v6213_v2 }
 0x9d4   : > { %6009 = vmatprep.subr.mxu1 %v6213_v2 }
 0x9d5   : > { %6010 = vmatpush3.msra.mxu1 %v5195_v50 }
 0x9d6   : > { %6011 = vmatprep.subr.mxu1 %v6213_v2 }
 0x9d7   : > { %6012 = vmatpush3.msra.mxu1 %v5194_v60 }
 0x9d8   : > { %6013 = vmatprep.subr.mxu1 %v6213_v2 }
 0x9d9   : > { %6014 = vmatpush3.msra.mxu1 %v5193_v1 }
 0x9da   : > { %6029 = vmatprep.subr.mxu1 %v6213_v2  ;;  %6016 = vmatmul.mubr.msk.f32.vlgmr.msra.gmra.mxu1 %vm279_vm0, %v7104_v53 }
 0x9db   : > { %6030 = vmatpush3.msra.mxu1 %v5206_v4  ;;  %6037 = vmatprep.mubr.msk.f32.mxu1 %vm6214_vm1, %v6213_v2 }
 0x9dc   : > { %6031 = vmatprep.subr.mxu1 %v6213_v2 }
 0x9dd   : > { %6032 = vmatpush3.msra.mxu1 %v5205_v8 }
 0x9de   : > { %6033 = vmatprep.subr.mxu1 %v6213_v2 }
 0x9df   : > { %6034 = vmatpush3.msra.mxu1 %v5204_v0 }
 0x9e0   : > { %6035 = vmatprep.subr.mxu1 %v6213_v2 }
 0x9e1   : > { %6036 = vmatpush3.msra.mxu1 %v5203_v3 }
 0x9e2   : > { %6051 = vmatprep.subr.mxu1 %v6213_v2  ;;  %6038 = vmatmul.mubr.msk.f32.vlgmr.msra.gmra.mxu1 %vm279_vm0, %v7104_v53 }
 0x9e3   : > { %6052 = vmatpush3.msra.mxu1 %v5216_v5  ;;  %6059 = vmatprep.mubr.msk.f32.mxu1 %vm6214_vm1, %v6213_v2 }
 0x9e4   : > { %6053 = vmatprep.subr.mxu1 %v6213_v2 }
 0x9e5   : > { %6054 = vmatpush3.msra.mxu1 %v5215_v7 }
 0x9e6   : > { %6055 = vmatprep.subr.mxu1 %v6213_v2 }
 0x9e7   : > { %6056 = vmatpush3.msra.mxu1 %v5214_v9 }
 0x9e8   : > { %6057 = vmatprep.subr.mxu1 %v6213_v2 }
 0x9e9   : > { %6058 = vmatpush3.msra.mxu1 %v5213_v10 }
 0x9ea   : > { %6060 = vmatmul.mubr.msk.f32.vlgmr.msra.gmra.mxu1 %vm279_vm0, %v7104_v53  ;;  %6073 = vmatprep.subr.mxu1 %v6213_v2 }
 0x9eb   : > { %6075 = vmatprep.mubr.msk.f32.mxu1 %vm6214_vm1, %v6213_v2 }
 0xa7a   : > { %v3633_v12 = vpop.f32.mrf.mxu1 }
 0xa7b   : > { %5939 = vmatmul.mubr.msk.f32.vlgmr.msra.gmra.mxu0 %vm1192_vm3, %v3633_v12 }
 0xa7c   : > { %5953 = vmatpush3.msra.mxu0 %v3794_v11  ;;  %v5935_v14 = vpop.f32.mrf.mxu1  ;;  %5960 = vmatprep.mubr.msk.f32.mxu0 %vm6214_vm1, %v6213_v2 }
 0xa7d   : > { %5954 = vmatprep.subr.mxu0 %v6213_v2 }
 0xa7e   : > { %5955 = vmatpush3.msra.mxu0 %v3793_v13 }
 0xa7f   : > { %5956 = vmatprep.subr.mxu0 %v6213_v2 }
 0xa80   : > { %5957 = vmatpush3.msra.mxu0 %v3792_v15 }
 0xa81   : > { %5958 = vmatprep.subr.mxu0 %v6213_v2 }
 0xa82   : > { %5959 = vmatpush3.msra.mxu0 %v3791_v16  ;;  %v3786_v19 = vpop.f32.mrf.mxu1 }
 0xa83   : > { %5961 = vmatmul.mubr.msk.f32.vlgmr.msra.gmra.mxu0 %vm279_vm0, %v7104_v53  ;;  %5974 = vmatprep.subr.mxu0 %v6213_v2  ;;  %3790 = vst.msk [vmem:[#allocation2] sm:$0x3] %vm353_vm2, %v3786_v19 }
 0xa84   : > { %5975 = vmatpush3.msra.mxu0 %v5181_v18  ;;  %5982 = vmatprep.mubr.msk.f32.mxu0 %vm6214_vm1, %v6213_v2  ;;  %v5951_v21 = vpop.f32.mrf.mxu1  ;;  %v5226_v18 = vld [vmem:[%s7416_s4 + $0x18] sm:$0xff] }
 0xa85   : > { %5976 = vmatprep.subr.mxu0 %v6213_v2 }
 0xa86   : > { %5977 = vmatpush3.msra.mxu0 %v5180_v20 }
 0xa87   : > { %5978 = vmatprep.subr.mxu0 %v6213_v2 }
 0xa88   : > { %5979 = vmatpush3.msra.mxu0 %v5179_v22 }
 0xa89   : > { %5980 = vmatprep.subr.mxu0 %v6213_v2 }
 0xa8a   : > { %5981 = vmatpush3.msra.mxu0 %v5178_v23  ;;  %v3936_v40 = vpop.f32.mrf.mxu1  ;;  %v4856_v23 = vld [vmem:[%s7418_s6] sm:$0xff] }
 0xa8b   : > { %5983 = vmatmul.mubr.msk.f32.vlgmr.msra.gmra.mxu0 %vm279_vm0, %v7104_v53  ;;  %5996 = vmatprep.subr.mxu0 %v6213_v2  ;;  %3940 = vst.msk [vmem:[#allocation4] sm:$0x3] %vm353_vm2, %v3936_v40 }
 0xa8c   : > { %5997 = vmatpush3.msra.mxu0 %v5191_v24  ;;  %6004 = vmatprep.mubr.msk.f32.mxu0 %vm6214_vm1, %v6213_v2  ;;  %v5973_v41 = vpop.f32.mrf.mxu1 }
 0xa8d   : > { %5998 = vmatprep.subr.mxu0 %v6213_v2 }
 0xa8e   : > { %5999 = vmatpush3.msra.mxu0 %v5190_v25 }
 0xa8f   : > { %6000 = vmatprep.subr.mxu0 %v6213_v2 }
 0xa90   : > { %6001 = vmatpush3.msra.mxu0 %v5189_v26 }
 0xa91   : > { %6002 = vmatprep.subr.mxu0 %v6213_v2 }
 0xa92   : > { %6003 = vmatpush3.msra.mxu0 %v5188_v27  ;;  %v4086_v42 = vpop.f32.mrf.mxu1 }
 0xa93   : > { %6005 = vmatmul.mubr.msk.f32.vlgmr.msra.gmra.mxu0 %vm279_vm0, %v7104_v53  ;;  %6018 = vmatprep.subr.mxu0 %v6213_v2  ;;  %4090 = vst.msk [vmem:[#allocation3 + $0x2] sm:$0x3] %vm353_vm2, %v4086_v42 }
 0xa94   : > { %6019 = vmatpush3.msra.mxu0 %v5201_v28  ;;  %6026 = vmatprep.mubr.msk.f32.mxu0 %vm6214_vm1, %v6213_v2  ;;  %v5995_v43 = vpop.f32.mrf.mxu1 }
 0xa95   : > { %6020 = vmatprep.subr.mxu0 %v6213_v2 }
 0xa96   : > { %6021 = vmatpush3.msra.mxu0 %v5200_v29 }
 0xa97   : > { %6022 = vmatprep.subr.mxu0 %v6213_v2 }
 0xa98   : > { %6023 = vmatpush3.msra.mxu0 %v5199_v30 }
 0xa99   : > { %6024 = vmatprep.subr.mxu0 %v6213_v2 }
 0xa9a   : > { %6025 = vmatpush3.msra.mxu0 %v5198_v31  ;;  %v4236_v44 = vpop.f32.mrf.mxu1 }
 0xa9b   : > { %6027 = vmatmul.mubr.msk.f32.vlgmr.msra.gmra.mxu0 %vm279_vm0, %v7104_v53  ;;  %6040 = vmatprep.subr.mxu0 %v6213_v2  ;;  %4240 = vst.msk [vmem:[#allocation2 + $0x4] sm:$0x3] %vm353_vm2, %v4236_v44 }
 0xa9c   : > { %6041 = vmatpush3.msra.mxu0 %v5211_v32  ;;  %6048 = vmatprep.mubr.msk.f32.mxu0 %vm6214_vm1, %v6213_v2  ;;  %v6017_v45 = vpop.f32.mrf.mxu1 }
 0xa9d   : > { %6042 = vmatprep.subr.mxu0 %v6213_v2 }
 0xa9e   : > { %6043 = vmatpush3.msra.mxu0 %v5210_v33 }
 0xa9f   : > { %6044 = vmatprep.subr.mxu0 %v6213_v2 }
 0xaa0   : > { %6045 = vmatpush3.msra.mxu0 %v5209_v34 }
 0xaa1   : > { %6046 = vmatprep.subr.mxu0 %v6213_v2 }
 0xaa2   : > { %6047 = vmatpush3.msra.mxu0 %v5208_v35  ;;  %v4386_v46 = vpop.f32.mrf.mxu1 }
 0xaa3   : > { %6049 = vmatmul.mubr.msk.f32.vlgmr.msra.gmra.mxu0 %vm279_vm0, %v7104_v53  ;;  %6062 = vmatprep.subr.mxu0 %v6213_v2  ;;  %4390 = vst.msk [vmem:[#allocation4 + $0x4] sm:$0x3] %vm353_vm2, %v4386_v46 }
 0xaa4   : > { %6063 = vmatpush3.msra.mxu0 %v5221_v36  ;;  %6070 = vmatprep.mubr.msk.f32.mxu0 %vm6214_vm1, %v6213_v2  ;;  %v6039_v47 = vpop.f32.mrf.mxu1 }
 0xaa5   : > { %6064 = vmatprep.subr.mxu0 %v6213_v2 }
 0xaa6   : > { %6065 = vmatpush3.msra.mxu0 %v5220_v37 }
 0xaa7   : > { %6066 = vmatprep.subr.mxu0 %v6213_v2 }
 0xaa8   : > { %6067 = vmatpush3.msra.mxu0 %v5219_v38 }
 0xaa9   : > { %6068 = vmatprep.subr.mxu0 %v6213_v2 }
 0xaaa   : > { %6069 = vmatpush3.msra.mxu0 %v5218_v39  ;;  %v4536_v48 = vpop.f32.mrf.mxu1 }
 0xaab   : > { %6071 = vmatmul.mubr.msk.f32.vlgmr.msra.gmra.mxu0 %vm279_vm0, %v7104_v53  ;;  %6078 = vmatprep.subr.mxu0 %v6213_v2  ;;  %4540 = vst.msk [vmem:[#allocation3 + $0x6] sm:$0x3] %vm353_vm2, %v4536_v48 }
 0xaac   : > { %6080 = vmatprep.mubr.msk.f32.mxu0 %vm6214_vm1, %v6213_v2  ;;  %v6061_v49 = vpop.f32.mrf.mxu1 }
 0xb3b   : > { %v3708_v52 = vpop.f32.mrf.mxu0 }
 0xb3c   : > { %v3712_v53 = vadd.f32 %v3708_v52, %v2567_v51 }
 0xb3d   : > { %v5940_v54 = vpop.f32.mrf.mxu0 }
 0xb43   : > { %v3861_v55 = vpop.f32.mrf.mxu0 }
 0xb44   : > { %3865 = vst.msk [vmem:[#allocation3] sm:$0x3] %vm353_vm2, %v3861_v55 }
 0xb45   : > { %v5962_v56 = vpop.f32.mrf.mxu0 }
 0xb4b   : > { %v4011_v57 = vpop.f32.mrf.mxu0 }
 0xb4c   : > { %4015 = vst.msk [vmem:[#allocation2 + $0x2] sm:$0x3] %vm353_vm2, %v4011_v57 }
 0xb4d   : > { %v5984_v58 = vpop.f32.mrf.mxu0 }
 0xb53   : > { %v4161_v59 = vpop.f32.mrf.mxu0 }
 0xb54   : > { %4165 = vst.msk [vmem:[#allocation4 + $0x2] sm:$0x3] %vm353_vm2, %v4161_v59 }
 0xb55   : > { %v6006_v61 = vpop.f32.mrf.mxu0 }
 0xb5b   : > { %v4311_v62 = vpop.f32.mrf.mxu0 }
 0xb5c   : > { %4315 = vst.msk [vmem:[#allocation3 + $0x4] sm:$0x3] %vm353_vm2, %v4311_v62 }
 0xb5d   : > { %v6028_v63 = vpop.f32.mrf.mxu0 }
 0xb63   : > { %v4461_v6 = vpop.f32.mrf.mxu0  ;;  %v4617_v17 = vld [vmem:[#allocation3] sm:$0xff] }
 0xb64   : > { %4465 = vst.msk [vmem:[#allocation2 + $0x6] sm:$0x3] %vm353_vm2, %v4461_v6  ;;  %6074 = vmatpush3.xpose.msk.msra.mxu1 %vm1192_vm3, %v4617_v17 }
 0xb65   : > { %v6050_v50 = vpop.f32.mrf.mxu0  ;;  %6083 = vmatprep.subr.mxu1 %v6213_v2 }
 0xb6b   : > { %v4611_v60 = vpop.f32.mrf.mxu0  ;;  %v4616_v1 = vld [vmem:[#allocation2] sm:$0xff] }
 0xb6c   : > { %4615 = vst.msk [vmem:[#allocation4 + $0x6] sm:$0x3] %vm353_vm2, %v4611_v60  ;;  %6076 = vmatmul.mubr.msk.f32.vlgmr.msra.gmra.mxu1 %vm1192_vm3, %v4616_v1 }
 0xb6d   : > { %v6072_v4 = vpop.f32.mrf.mxu0  ;;  %6085 = vmatprep.mubr.msk.f32.mxu1 %vm6214_vm1, %v6213_v2  ;;  %6084 = vmatpush3.msra.mxu1 %v5226_v18 }
 0xb73   : > { %v4618_v8 = vld [vmem:[#allocation4] sm:$0xff] }
 0xb74   : > { %6079 = vmatpush3.msra.mxu0 %v4618_v8 }
 0xb75   : > { %6088 = vmatprep.subr.mxu0 %v6213_v2 }
 0xc2c   : > { %v4691_v0 = vpop.f32.mrf.mxu1 }
 0xc2d   : > { %v4695_v3 = vmul.f32 0.35355338, %v4691_v0 }
 0xc2e   : > { %v6077_v5 = vpop.f32.mrf.mxu1 }
 0xc2f   : > { %v4696_v7 = vsel %vm1192_vm3, %v4695_v3, -inf }
 0xc30   : > { %4697 = vmax.xlane.f32.xlu0 %v4696_v7 }
 0xcb9   : > { %v4698_v9 = vpop.xlane.xlu0 %4697 }
 0xcba   : > { %v4699_v10 = vsub.f32 %v4695_v3, %v4698_v9 }
 0xcbc   : > { %v4700_v11 = vmul.f32 1.442695, %v4699_v10 }
 0xcbe   : > { %6146 = vpow2.f32 %v4700_v11 }
 0xccb   : > { %v6147_v12 = vpop.eup %6146 }
 0xccc   : > { %v4702_v13 = vsel %vm1192_vm3, %v6147_v12, 0.0 }
 0xccd   : > { %4703 = vadd.xlane.f32.xlu1 %v4702_v13 }
 0xd56   : > { %v4704_v14 = vpop.xlane.xlu1 %4703 }
 0xd57   : > { %6148 = vrcp.f32 %v4704_v14 }
 0xd64   : > { %v6149_v15 = vpop.eup %6148 }
 0xd65   : > { %v4706_v16 = vmul.f32 %v6149_v15, %v6147_v12 }
 0xd67   : > { %6081 = vmatmul.mubr.msk.f32.vlgmr.msra.gmra.mxu0 %vm1192_vm3, %v4706_v16 }
 0xd68   : > { %6090 = vmatprep.mubr.msk.f32.mxu0 %vm6214_vm1, %v6213_v2  ;;  %v5228_v2 = vld [vmem:[%s7417_s5] ss:$0 sm:$0xff] }
 0xe27   : > { %v4776_v19 = vpop.f32.mrf.mxu0 }
 0xe28   : > { %6086 = vmatmul.mubr.msk.f32.vlgmr.msra.gmra.mxu1 %vm1192_vm3, %v4776_v19 }
 0xe29   : > { %v6082_v20 = vpop.f32.mrf.mxu0 }
 0xee8   : > { %v4851_v21 = vpop.f32.mrf.mxu1 }
 0xee9   : > { %v4855_v22 = vadd.f32 %v4851_v21, %v3712_v53 }
 0xeea   : > { %v6087_v24 = vpop.f32.mrf.mxu1 }
 0xeeb   : > { %6089 = vmatpush3.msra.mxu0 %v4855_v22 }
 0xeec   : > { %6091 = vmatmul.mubr.msk.f32.vlgmr.msra.gmra.mxu0 %vm1192_vm3, %v4856_v23 }
 0xfac   : > { %v4933_v25 = vpop.f32.mrf.mxu0 }
 0xfad   : > { %v4934_v26 = vadd.f32 %v5228_v2, %v4933_v25 }
 0xfae   : > { %v6092_v27 = vpop.f32.mrf.mxu0 }
 0xfaf   : > { %4937 = vst.msk [vmem:[%s269_s22] sm:$0xff] %vm279_vm0, %v4934_v26 }
 0xfb0   : > { %6164 = shalt.err (!%p6161_p3)
}
 0xfb1   : > { %s6165_s18 = scalar_lea.hbm %s7376_s9, 128  ;;  %s6169_s20 = scalar_lea.hbm %s7419_s7, 256 }
 0xfb2   : > { %p6166_p4 = scmp.ne.s32.totalorder %s7376_s9, %s6165_s18  ;;  %p6170_p9 = scmp.lt.s32.totalorder %s7376_s9, %s7419_s7 }
 0xfb3   : > { %p6171_p10 = scmp.lt.s32.totalorder %s6169_s20, %s6165_s18 }
 0xfb4   : > { %p6167_p7 = pnand %p6166_p4, %p6294_p5 }
 0xfb5   : > { %p6172_p11 = por %p6171_p10, %p6170_p9 }
 0xfb6   : > { %p6168_p8 = pneg %p6167_p7 }
 0xfb8   : > { %p6173_p12 = pnand %p6172_p11, %p6168_p8 }
 0xfba   : > { %6176 = shalt.err (!%p6173_p12)
}
 0xfbb   : > { %6093 = dma.vmem_to_hbm [thread:$0]  (%p6294_p5), %s4953_s23, 128, %s7376_s9, %s4939_s17  }
 0xfbc PF: > { %p6099_p13 = scmp.ge.s32.totalorder %s6211_s27, 2  ;;  %s4964_s29 = sand.u32 1, %s6199_s24  }
 0xfbd   : > { %s4965_s8 = scalar_lea.sflag [#allocation6], %s4964_s29 }
 0xfbe   : > { %p6096_p0 = pnand %p6099_p13, %p6298_p6 }
 0xfc0   : > { %p6097_p1 = pneg %p6096_p0 }
 0xfc2   : > { %6194 = dma.done.wait (%p6097_p1), %s4965_s8, 128  }
 0xfc3   : > { %6196 = vsyncadd (%p6097_p1), %s4965_s8, 4294967168  ;;  %p17_p2 = scmp.ge.s32.totalorder %s6281_s30, 4   ;;  %s7422_s24 = smov %s6203_s25 }
 0xfc4   : > { %s7423_s25 = smov %s6207_s26  ;;  %s7424_s26 = smov %s6292_s10 }
 0xfc5   : > { %s7425_s27 = smov %s6281_s30  ;;  %19 = sbr.rel (!%p17_p2) target bundleno = 3 (0x3), region = 95 }
 0xfca   :  { %4970 = vsyncpa [#allocation6], 1 }
 0xfcb   :  { %4972 = vsyncpa [#allocation6 + $0x1], 1 }

</bundles_post_ra>
